<compile_context>
chip_gen: v6e
topology: v6e:2x2x1
jax: 0.10.0
libtpu: 0.0.40
codegen_flags: <defaults>
</compile_context>

<pallas_src>
import numpy as np
import jax
import jax.numpy as jnp
from jax.experimental import pallas as pl
from jax.experimental.pallas import tpu as pltpu

# Architecture constants implied by the module (fc1 = 16*5*5 => 32x32 input).
H0, W0, C0 = 32, 32, 3
C1, K1 = 6, 5
C2, K2 = 16, 5
HO1, WO1 = H0 - K1 + 1, W0 - K1 + 1          # 28, 28
HO_1 = HO1
HP1, WP1 = HO1 // 2, WO1 // 2                # 14, 14
HO2, WO2 = HP1 - K2 + 1, WP1 - K2 + 1        # 10, 10
HP2, WP2 = HO2 // 2, WO2 // 2                # 5, 5
NP = 128                                     # lane pad for pooled conv outputs
NCLASS = 43


# ----------------------------------------------------------------------------------
# The single fused Pallas kernel (one batch sample per grid step)
# ----------------------------------------------------------------------------------
def _laplace_ft_kernel(x_ref, t1_ref, cb1_ref, t2_ref, cb2_ref,
                       w1_ref, b1_ref, w2_ref, b2_ref, w3_ref, b3_ref,
                       out_ref, s1_ref, s2_ref):
    f32 = jnp.float32
    bf16 = jnp.bfloat16

    # Load the (already bf16) image once; the 5 vertical taps are static value slices.
    xb = x_ref[...]                                              # (32, 96) bf16

    # ---- conv1 (Toeplitz-in-lane) + bias + ReLU + 2x2 max-pool ----
    acc = jnp.dot(xb[0:HO1, :], t1_ref[0], preferred_element_type=f32)
    for i in range(1, K1):
        acc = acc + jnp.dot(xb[i:i + HO1, :], t1_ref[i], preferred_element_type=f32)
    m = jnp.maximum(acc[:, :NP], acc[:, NP:])                    # horizontal pool (aligned halves)
    s1_ref[...] = jnp.maximum(m + cb1_ref[...], 0.0)             # one dense (28,128) store
    # vertical pool: two stride-2 loads + value max; cast to bf16 ONCE for conv2
    p1 = jnp.maximum(s1_ref[pl.ds(0, HP1, stride=2), :],
                     s1_ref[pl.ds(1, HP1, stride=2), :]).astype(bf16)   # (14, 128)

    # ---- conv2 + bias + ReLU + 2x2 max-pool ----
    acc2 = jnp.dot(p1[0:HO2, :], t2_ref[0], preferred_element_type=f32)
    for i in range(1, K2):
        acc2 = acc2 + jnp.dot(p1[i:i + HO2, :], t2_ref[i], preferred_element_type=f32)
    m2 = jnp.maximum(acc2[:, :NP], acc2[:, NP:])
    s2_ref[...] = jnp.maximum(m2 + cb2_ref[...], 0.0)            # one dense (10,128) store
    p2 = jnp.maximum(s2_ref[pl.ds(0, HP2, stride=2), :],
                     s2_ref[pl.ds(1, HP2, stride=2), :])         # (5, 128) f32

    # Flatten (h, lane=(w,c)) into one lane-major row; NCHW flatten is folded into w1.
    flat = jnp.concatenate([p2[r:r + 1, :] for r in range(HP2)], axis=1).astype(bf16)  # (1, 640)

    # ---- fc1 + ReLU -> fc2 + ReLU -> fc3 (fc3 lane-padded to 128 for a dense store) ----
    h1 = jnp.maximum(jnp.dot(flat, w1_ref[...], preferred_element_type=f32)
                     + b1_ref[...], 0.0)                         # (1, 120)
    h2 = jnp.maximum(jnp.dot(h1.astype(bf16), w2_ref[...], preferred_element_type=f32)
                     + b2_ref[...], 0.0)                         # (1, 84)
    y = jnp.dot(h2.astype(bf16), w3_ref[...], preferred_element_type=f32) + b3_ref[...]
    out_ref[...] = y                                             # (1, 128) unmasked store


def laplace_ft_forward(x_nchw, prep):
    """Forward pass of LaplaceFT.  x_nchw: (B, 3, 32, 32) float32."""
    B = x_nchw.shape[0]
    # NCHW -> (B, H, W*C): rows = image rows, lanes = (w, c); pre-cast to bf16 (halves DMA).
    x3 = jnp.transpose(x_nchw, (0, 2, 3, 1)).reshape(B, H0, W0 * C0).astype(jnp.bfloat16)

    def wspec2(shape):
        return pl.BlockSpec(shape, lambda b: (0, 0))      # weights stay VMEM-resident

    def wspec3(shape):
        return pl.BlockSpec(shape, lambda b: (0, 0, 0))

    out = pl.pallas_call(
        _laplace_ft_kernel,
        out_shape=jax.ShapeDtypeStruct((B, 1, NP), jnp.float32),
        grid_spec=pltpu.PrefetchScalarGridSpec(
            num_scalar_prefetch=0,
            grid=(B,),
            in_specs=[
                pl.BlockSpec((None, H0, W0 * C0), lambda b: (b, 0, 0)),   # per-sample image
                wspec3((K1, W0 * C0, 2 * NP)),                            # t1
                wspec2((1, NP)),                                          # cb1
                wspec3((K2, NP, 2 * NP)),                                 # t2
                wspec2((1, NP)),                                          # cb2
                wspec2((HP2 * NP, 120)),                                  # w1
                wspec2((1, 120)),                                         # b1
                wspec2((120, 84)),                                        # w2
                wspec2((1, 84)),                                          # b2
                wspec2((84, NP)),                                         # w3 (lane-padded)
                wspec2((1, NP)),                                          # b3 (lane-padded)
            ],
            out_specs=pl.BlockSpec((None, 1, NP), lambda b: (b, 0, 0)),
            scratch_shapes=[
                pltpu.VMEM((HO1, NP), jnp.float32),   # conv1 post-ReLU, pre-vertical-pool
                pltpu.VMEM((HO2, NP), jnp.float32),   # conv2 post-ReLU, pre-vertical-pool
            ]),
        compiler_params=pltpu.CompilerParams(
            dimension_semantics=("parallel",)),       # v7x: split batch across TensorCores
    )(x3, prep["t1"], prep["cb1"], prep["t2"], prep["cb2"],
      prep["w1"], prep["b1"], prep["w2"], prep["b2"], prep["w3"], prep["b3"])
    return out[:, 0, :NCLASS]


# ----------------------------------------------------------------------------------
# Host-side parameter preparation (done once, at init)
# ----------------------------------------------------------------------------------
def _pooled_toeplitz(w, w_in_px, row_pad, npad):
    """Banded matrices turning conv (stride 1, VALID) into per-vertical-tap matmuls.
    w: (Cout, Cin, kh, kw).  Input row lane index = w*Cin + c (width row_pad, zero
    padded).  Output column index = parity*npad + wp*Cout + c (even-ow | odd-ow)."""
    cout, cin, kh, kw = w.shape
    wo = w_in_px - kw + 1
    assert wo % 2 == 0
    wp_n = wo // 2
    assert w_in_px * cin <= row_pad and wp_n * cout <= npad
    T = np.zeros((kh, row_pad, 2 * npad), np.float32)
    w = np.asarray(w, np.float32)
    for i in range(kh):
        for dx in range(kw):
            blk = w[:, :, i, dx].T                    # (Cin, Cout)
            for par in range(2):
                for wp in range(wp_n):
                    w_in = 2 * wp + par + dx
                    r0 = w_in * cin
                    c0 = par * npad + wp * cout
                    T[i, r0:r0 + cin, c0:c0 + cout] = blk
    return T


def _pooled_bias(b, wp_n, npad):
    cb = np.zeros((1, npad), np.float32)
    b = np.asarray(b, np.float32)
    cb[0, :wp_n * b.shape[0]] = np.tile(b, wp_n)      # column index = wp*Cout + c
    return cb


def _fc1_rows(fc1_w, hp, wp, c, npad):
    """Permute fc1 rows from the PyTorch NCHW flatten order (c*hp*wp + h*wp + w) to the
    kernel's lane-padded (h*npad + w*c_out + c) layout (zero rows on the pad lanes)."""
    fc1_w = np.asarray(fc1_w, np.float32)             # (120, 400), torch (out, in)
    out_f = fc1_w.shape[0]
    w1 = np.zeros((hp * npad, out_f), np.float32)
    for ci in range(c):
        for h in range(hp):
            for w in range(wp):
                w1[h * npad + w * c + ci, :] = fc1_w[:, ci * (hp * wp) + h * wp + w]
    return w1


def _pad_lanes(a, n):
    a = np.asarray(a, np.float32)
    out = np.zeros((a.shape[0], n), np.float32)
    out[:, :a.shape[1]] = a
    return out


def prepare_params(tp):
    """Convert PyTorch-layout parameters (Conv2d OIHW, Linear (out,in)) to kernel form."""
    return {
        "t1": jnp.asarray(_pooled_toeplitz(tp["conv1_w"], W0, W0 * C0, NP), jnp.bfloat16),
        "cb1": jnp.asarray(_pooled_bias(tp["conv1_b"], WP1, NP)),
        "t2": jnp.asarray(_pooled_toeplitz(tp["conv2_w"], WP1, NP, NP), jnp.bfloat16),
        "cb2": jnp.asarray(_pooled_bias(tp["conv2_b"], WP2, NP)),
        "w1": jnp.asarray(_fc1_rows(tp["fc1_w"], HP2, WP2, C2, NP), jnp.bfloat16),
        "b1": jnp.asarray(tp["fc1_b"], jnp.float32).reshape(1, -1),
        "w2": jnp.asarray(np.asarray(tp["fc2_w"], np.float32).T, jnp.bfloat16),
        "b2": jnp.asarray(tp["fc2_b"], jnp.float32).reshape(1, -1),
        # fc3 lane-padded to 128 so the final store is unmasked; wrapper slices [:, :43].
        "w3": jnp.asarray(_pad_lanes(np.asarray(tp["fc3_w"], np.float32).T, NP), jnp.bfloat16),
        "b3": jnp.asarray(_pad_lanes(np.asarray(tp["fc3_b"], np.float32).reshape(1, -1), NP)),
    }


def init_torch_params(key):
    """PyTorch-layout parameters (uniform +-1/sqrt(fan_in), like nn.Conv2d / nn.Linear)."""
    ks = jax.random.split(key, 10)

    def u(k, shape, fan_in):
        bound = 1.0 / float(np.sqrt(fan_in))
        return jax.random.uniform(k, shape, jnp.float32, -bound, bound)

    return {
        "conv1_w": u(ks[0], (C1, C0, K1, K1), C0 * K1 * K1), "conv1_b": u(ks[1], (C1,), C0 * K1 * K1),
        "conv2_w": u(ks[2], (C2, C1, K2, K2), C1 * K2 * K2), "conv2_b": u(ks[3], (C2,), C1 * K2 * K2),
        "fc1_w": u(ks[4], (120, C2 * HP2 * WP2), 400), "fc1_b": u(ks[5], (120,), 400),
        "fc2_w": u(ks[6], (84, 120), 120), "fc2_b": u(ks[7], (84,), 120),
        "fc3_w": u(ks[8], (NCLASS, 84), 84), "fc3_b": u(ks[9], (NCLASS,), 84),
    }


# ----------------------------------------------------------------------------------
# Plain-JAX reference (module semantics; operands rounded to bf16 to mirror the MXU path)
# ----------------------------------------------------------------------------------
def reference_forward(x_nchw, tp):
    f32, bf16 = jnp.float32, jnp.bfloat16

    def conv(x, w, b):
        y = jax.lax.conv_general_dilated(
            x.astype(bf16), jnp.asarray(w).astype(bf16), window_strides=(1, 1),
            padding="VALID", dimension_numbers=("NCHW", "OIHW", "NCHW"),
            preferred_element_type=f32)
        return y + jnp.asarray(b, f32).reshape(1, -1, 1, 1)

    def pool(x):
        return jax.lax.reduce_window(x, -jnp.inf, jax.lax.max,
                                     (1, 1, 2, 2), (1, 1, 2, 2), "VALID")

    def lin(x, w, b):
        return jnp.dot(x.astype(bf16), jnp.asarray(w).T.astype(bf16),
                       preferred_element_type=f32) + jnp.asarray(b, f32)

    x = pool(jax.nn.relu(conv(x_nchw, tp["conv1_w"], tp["conv1_b"])))   # do1 = identity
    x = pool(jax.nn.relu(conv(x, tp["conv2_w"], tp["conv2_b"])))        # do2 = identity
    x = x.reshape(x.shape[0], -1)                                       # NCHW flatten (c, h, w)
    x = jax.nn.relu(lin(x, tp["fc1_w"], tp["fc1_b"]))                   # do3 = identity
    x = jax.nn.relu(lin(x, tp["fc2_w"], tp["fc2_b"]))                   # do4 = identity
    return lin(x, tp["fc3_w"], tp["fc3_b"])


if __name__ == "__main__":
    key = jax.random.PRNGKey(0)
    pkey, xkey = jax.random.split(key)
    torch_params = init_torch_params(pkey)
    prep = prepare_params(torch_params)

    # 32x32 input is implied by fc1 = 16*5*5; batch kept small.
    x = jax.random.normal(xkey, (2, C0, H0, W0), dtype=jnp.float32)

    fwd = jax.jit(laplace_ft_forward)
    out = fwd(x, prep)
    jax.block_until_ready(out)
    assert out.shape == (2, NCLASS), out.shape
    assert bool(jnp.all(jnp.isfinite(out)))

    ref = reference_forward(x, torch_params)
    max_diff = float(jnp.max(jnp.abs(out - ref)))
    assert jnp.allclose(out, ref, atol=1e-2, rtol=5e-2), max_diff

    print("KERNEL_OK")
</pallas_src>

<mosaic_0001>
module attributes {stable_mosaic.version = 11 : i64} {
  func.func @_laplace_ft_kernel(%arg0: i32, %arg1: memref<1x32x96xbf16, #tpu.memory_space<vmem>>, %arg2: memref<5x96x256xbf16, #tpu.memory_space<vmem>>, %arg3: memref<1x128xf32, #tpu.memory_space<vmem>>, %arg4: memref<5x128x256xbf16, #tpu.memory_space<vmem>>, %arg5: memref<1x128xf32, #tpu.memory_space<vmem>>, %arg6: memref<640x120xbf16, #tpu.memory_space<vmem>>, %arg7: memref<1x120xf32, #tpu.memory_space<vmem>>, %arg8: memref<120x84xbf16, #tpu.memory_space<vmem>>, %arg9: memref<1x84xf32, #tpu.memory_space<vmem>>, %arg10: memref<84x128xbf16, #tpu.memory_space<vmem>>, %arg11: memref<1x128xf32, #tpu.memory_space<vmem>>, %arg12: memref<1x1x128xf32, #tpu.memory_space<vmem>>, %arg13: memref<28x128xf32, #tpu.memory_space<vmem>>, %arg14: memref<10x128xf32, #tpu.memory_space<vmem>>) attributes {dimension_semantics = [#tpu.dimension_semantics<parallel>], iteration_bounds = array<i64: 2>, scalar_prefetch = 0 : i64, scratch_operands = 2 : i64, tpu.core_type = #tpu.core_type<tc>, window_params = [{transform_indices = @transform_0, window_bounds = array<i64: 1, 32, 96>}, {pipeline_mode = #tpu.pipeline_mode<synchronous>, transform_indices = @transform_1, window_bounds = array<i64: 5, 96, 256>}, {pipeline_mode = #tpu.pipeline_mode<synchronous>, transform_indices = @transform_2, window_bounds = array<i64: 1, 128>}, {pipeline_mode = #tpu.pipeline_mode<synchronous>, transform_indices = @transform_3, window_bounds = array<i64: 5, 128, 256>}, {pipeline_mode = #tpu.pipeline_mode<synchronous>, transform_indices = @transform_4, window_bounds = array<i64: 1, 128>}, {pipeline_mode = #tpu.pipeline_mode<synchronous>, transform_indices = @transform_5, window_bounds = array<i64: 640, 120>}, {pipeline_mode = #tpu.pipeline_mode<synchronous>, transform_indices = @transform_6, window_bounds = array<i64: 1, 120>}, {pipeline_mode = #tpu.pipeline_mode<synchronous>, transform_indices = @transform_7, window_bounds = array<i64: 120, 84>}, {pipeline_mode = #tpu.pipeline_mode<synchronous>, transform_indices = @transform_8, window_bounds = array<i64: 1, 84>}, {pipeline_mode = #tpu.pipeline_mode<synchronous>, transform_indices = @transform_9, window_bounds = array<i64: 84, 128>}, {pipeline_mode = #tpu.pipeline_mode<synchronous>, transform_indices = @transform_10, window_bounds = array<i64: 1, 128>}, {transform_indices = @transform_11, window_bounds = array<i64: 1, 1, 128>}]} {
    %c0 = arith.constant 0 : index
    %c0_0 = arith.constant 0 : index
    %c0_1 = arith.constant 0 : index
    %0 = vector.load %arg1[%c0, %c0_0, %c0_1] : memref<1x32x96xbf16, #tpu.memory_space<vmem>>, vector<1x32x96xbf16>
    %1 = vector.shape_cast %0 : vector<1x32x96xbf16> to vector<32x96xbf16>
    %2 = vector.extract_strided_slice %1 {offsets = [0, 0], sizes = [28, 96], strides = [1, 1]} : vector<32x96xbf16> to vector<28x96xbf16>
    %c0_2 = arith.constant 0 : index
    %c0_3 = arith.constant 0 : index
    %c0_4 = arith.constant 0 : index
    %3 = vector.load %arg2[%c0_2, %c0_3, %c0_4] : memref<5x96x256xbf16, #tpu.memory_space<vmem>>, vector<1x96x256xbf16>
    %4 = vector.shape_cast %3 : vector<1x96x256xbf16> to vector<96x256xbf16>
    %cst = arith.constant dense<0.000000e+00> : vector<28x256xf32>
    %5 = tpu.matmul %2, %4, %cst {dimension_numbers = #tpu.dot_dimension_numbers<[1], [0], [0], [1], [0, 0, 1, 1], [], []>} : vector<28x96xbf16>, vector<96x256xbf16>, vector<28x256xf32> -> vector<28x256xf32>
    %6 = vector.extract_strided_slice %1 {offsets = [1, 0], sizes = [28, 96], strides = [1, 1]} : vector<32x96xbf16> to vector<28x96xbf16>
    %c1 = arith.constant 1 : index
    %c0_5 = arith.constant 0 : index
    %c0_6 = arith.constant 0 : index
    %7 = vector.load %arg2[%c1, %c0_5, %c0_6] : memref<5x96x256xbf16, #tpu.memory_space<vmem>>, vector<1x96x256xbf16>
    %8 = vector.shape_cast %7 : vector<1x96x256xbf16> to vector<96x256xbf16>
    %cst_7 = arith.constant dense<0.000000e+00> : vector<28x256xf32>
    %9 = tpu.matmul %6, %8, %cst_7 {dimension_numbers = #tpu.dot_dimension_numbers<[1], [0], [0], [1], [0, 0, 1, 1], [], []>} : vector<28x96xbf16>, vector<96x256xbf16>, vector<28x256xf32> -> vector<28x256xf32>
    %10 = arith.addf %5, %9 : vector<28x256xf32>
    %11 = vector.extract_strided_slice %1 {offsets = [2, 0], sizes = [28, 96], strides = [1, 1]} : vector<32x96xbf16> to vector<28x96xbf16>
    %c2 = arith.constant 2 : index
    %c0_8 = arith.constant 0 : index
    %c0_9 = arith.constant 0 : index
    %12 = vector.load %arg2[%c2, %c0_8, %c0_9] : memref<5x96x256xbf16, #tpu.memory_space<vmem>>, vector<1x96x256xbf16>
    %13 = vector.shape_cast %12 : vector<1x96x256xbf16> to vector<96x256xbf16>
    %cst_10 = arith.constant dense<0.000000e+00> : vector<28x256xf32>
    %14 = tpu.matmul %11, %13, %cst_10 {dimension_numbers = #tpu.dot_dimension_numbers<[1], [0], [0], [1], [0, 0, 1, 1], [], []>} : vector<28x96xbf16>, vector<96x256xbf16>, vector<28x256xf32> -> vector<28x256xf32>
    %15 = arith.addf %10, %14 : vector<28x256xf32>
    %16 = vector.extract_strided_slice %1 {offsets = [3, 0], sizes = [28, 96], strides = [1, 1]} : vector<32x96xbf16> to vector<28x96xbf16>
    %c3 = arith.constant 3 : index
    %c0_11 = arith.constant 0 : index
    %c0_12 = arith.constant 0 : index
    %17 = vector.load %arg2[%c3, %c0_11, %c0_12] : memref<5x96x256xbf16, #tpu.memory_space<vmem>>, vector<1x96x256xbf16>
    %18 = vector.shape_cast %17 : vector<1x96x256xbf16> to vector<96x256xbf16>
    %cst_13 = arith.constant dense<0.000000e+00> : vector<28x256xf32>
    %19 = tpu.matmul %16, %18, %cst_13 {dimension_numbers = #tpu.dot_dimension_numbers<[1], [0], [0], [1], [0, 0, 1, 1], [], []>} : vector<28x96xbf16>, vector<96x256xbf16>, vector<28x256xf32> -> vector<28x256xf32>
    %20 = arith.addf %15, %19 : vector<28x256xf32>
    %21 = vector.extract_strided_slice %1 {offsets = [4, 0], sizes = [28, 96], strides = [1, 1]} : vector<32x96xbf16> to vector<28x96xbf16>
    %c4 = arith.constant 4 : index
    %c0_14 = arith.constant 0 : index
    %c0_15 = arith.constant 0 : index
    %22 = vector.load %arg2[%c4, %c0_14, %c0_15] : memref<5x96x256xbf16, #tpu.memory_space<vmem>>, vector<1x96x256xbf16>
    %23 = vector.shape_cast %22 : vector<1x96x256xbf16> to vector<96x256xbf16>
    %cst_16 = arith.constant dense<0.000000e+00> : vector<28x256xf32>
    %24 = tpu.matmul %21, %23, %cst_16 {dimension_numbers = #tpu.dot_dimension_numbers<[1], [0], [0], [1], [0, 0, 1, 1], [], []>} : vector<28x96xbf16>, vector<96x256xbf16>, vector<28x256xf32> -> vector<28x256xf32>
    %25 = arith.addf %20, %24 : vector<28x256xf32>
    %26 = vector.extract_strided_slice %25 {offsets = [0, 0], sizes = [28, 128], strides = [1, 1]} : vector<28x256xf32> to vector<28x128xf32>
    %27 = vector.extract_strided_slice %25 {offsets = [0, 128], sizes = [28, 128], strides = [1, 1]} : vector<28x256xf32> to vector<28x128xf32>
    %28 = arith.maximumf %26, %27 : vector<28x128xf32>
    %c0_17 = arith.constant 0 : index
    %c0_18 = arith.constant 0 : index
    %29 = vector.load %arg3[%c0_17, %c0_18] : memref<1x128xf32, #tpu.memory_space<vmem>>, vector<1x128xf32>
    %30 = vector.broadcast %29 : vector<1x128xf32> to vector<28x128xf32>
    %31 = arith.addf %28, %30 : vector<28x128xf32>
    %cst_19 = arith.constant 0.000000e+00 : f32
    %32 = vector.broadcast %cst_19 : f32 to vector<28x128xf32>
    %33 = arith.maximumf %31, %32 : vector<28x128xf32>
    %c0_20 = arith.constant 0 : index
    %c0_21 = arith.constant 0 : index
    %34 = vector.load %arg13[%c0_20, %c0_21] : memref<28x128xf32, #tpu.memory_space<vmem>>, vector<28x128xf32>
    tpu.vector_store %arg13[%c0_20, %c0_21], %33 {strides = array<i32>} : memref<28x128xf32, #tpu.memory_space<vmem>>, vector<28x128xf32>,
    %c0_22 = arith.constant 0 : index
    %c0_23 = arith.constant 0 : index
    %35 = tpu.strided_load %arg13[%c0_22, %c0_23] {strides = array<i32: 2, 1>} : memref<28x128xf32, #tpu.memory_space<vmem>>, vector<14x128xf32>
    %c1_24 = arith.constant 1 : index
    %c0_25 = arith.constant 0 : index
    %36 = tpu.strided_load %arg13[%c1_24, %c0_25] {strides = array<i32: 2, 1>} : memref<28x128xf32, #tpu.memory_space<vmem>>, vector<14x128xf32>
    %37 = arith.maximumf %35, %36 : vector<14x128xf32>
    %38 = arith.truncf %37 : vector<14x128xf32> to vector<14x128xbf16>
    %39 = vector.extract_strided_slice %38 {offsets = [0, 0], sizes = [10, 128], strides = [1, 1]} : vector<14x128xbf16> to vector<10x128xbf16>
    %c0_26 = arith.constant 0 : index
    %c0_27 = arith.constant 0 : index
    %c0_28 = arith.constant 0 : index
    %40 = vector.load %arg4[%c0_26, %c0_27, %c0_28] : memref<5x128x256xbf16, #tpu.memory_space<vmem>>, vector<1x128x256xbf16>
    %41 = vector.shape_cast %40 : vector<1x128x256xbf16> to vector<128x256xbf16>
    %cst_29 = arith.constant dense<0.000000e+00> : vector<10x256xf32>
    %42 = tpu.matmul %39, %41, %cst_29 {dimension_numbers = #tpu.dot_dimension_numbers<[1], [0], [0], [1], [0, 0, 1, 1], [], []>} : vector<10x128xbf16>, vector<128x256xbf16>, vector<10x256xf32> -> vector<10x256xf32>
    %43 = vector.extract_strided_slice %38 {offsets = [1, 0], sizes = [10, 128], strides = [1, 1]} : vector<14x128xbf16> to vector<10x128xbf16>
    %c1_30 = arith.constant 1 : index
    %c0_31 = arith.constant 0 : index
    %c0_32 = arith.constant 0 : index
    %44 = vector.load %arg4[%c1_30, %c0_31, %c0_32] : memref<5x128x256xbf16, #tpu.memory_space<vmem>>, vector<1x128x256xbf16>
    %45 = vector.shape_cast %44 : vector<1x128x256xbf16> to vector<128x256xbf16>
    %cst_33 = arith.constant dense<0.000000e+00> : vector<10x256xf32>
    %46 = tpu.matmul %43, %45, %cst_33 {dimension_numbers = #tpu.dot_dimension_numbers<[1], [0], [0], [1], [0, 0, 1, 1], [], []>} : vector<10x128xbf16>, vector<128x256xbf16>, vector<10x256xf32> -> vector<10x256xf32>
    %47 = arith.addf %42, %46 : vector<10x256xf32>
    %48 = vector.extract_strided_slice %38 {offsets = [2, 0], sizes = [10, 128], strides = [1, 1]} : vector<14x128xbf16> to vector<10x128xbf16>
    %c2_34 = arith.constant 2 : index
    %c0_35 = arith.constant 0 : index
    %c0_36 = arith.constant 0 : index
    %49 = vector.load %arg4[%c2_34, %c0_35, %c0_36] : memref<5x128x256xbf16, #tpu.memory_space<vmem>>, vector<1x128x256xbf16>
    %50 = vector.shape_cast %49 : vector<1x128x256xbf16> to vector<128x256xbf16>
    %cst_37 = arith.constant dense<0.000000e+00> : vector<10x256xf32>
    %51 = tpu.matmul %48, %50, %cst_37 {dimension_numbers = #tpu.dot_dimension_numbers<[1], [0], [0], [1], [0, 0, 1, 1], [], []>} : vector<10x128xbf16>, vector<128x256xbf16>, vector<10x256xf32> -> vector<10x256xf32>
    %52 = arith.addf %47, %51 : vector<10x256xf32>
    %53 = vector.extract_strided_slice %38 {offsets = [3, 0], sizes = [10, 128], strides = [1, 1]} : vector<14x128xbf16> to vector<10x128xbf16>
    %c3_38 = arith.constant 3 : index
    %c0_39 = arith.constant 0 : index
    %c0_40 = arith.constant 0 : index
    %54 = vector.load %arg4[%c3_38, %c0_39, %c0_40] : memref<5x128x256xbf16, #tpu.memory_space<vmem>>, vector<1x128x256xbf16>
    %55 = vector.shape_cast %54 : vector<1x128x256xbf16> to vector<128x256xbf16>
    %cst_41 = arith.constant dense<0.000000e+00> : vector<10x256xf32>
    %56 = tpu.matmul %53, %55, %cst_41 {dimension_numbers = #tpu.dot_dimension_numbers<[1], [0], [0], [1], [0, 0, 1, 1], [], []>} : vector<10x128xbf16>, vector<128x256xbf16>, vector<10x256xf32> -> vector<10x256xf32>
    %57 = arith.addf %52, %56 : vector<10x256xf32>
    %58 = vector.extract_strided_slice %38 {offsets = [4, 0], sizes = [10, 128], strides = [1, 1]} : vector<14x128xbf16> to vector<10x128xbf16>
    %c4_42 = arith.constant 4 : index
    %c0_43 = arith.constant 0 : index
    %c0_44 = arith.constant 0 : index
    %59 = vector.load %arg4[%c4_42, %c0_43, %c0_44] : memref<5x128x256xbf16, #tpu.memory_space<vmem>>, vector<1x128x256xbf16>
    %60 = vector.shape_cast %59 : vector<1x128x256xbf16> to vector<128x256xbf16>
    %cst_45 = arith.constant dense<0.000000e+00> : vector<10x256xf32>
    %61 = tpu.matmul %58, %60, %cst_45 {dimension_numbers = #tpu.dot_dimension_numbers<[1], [0], [0], [1], [0, 0, 1, 1], [], []>} : vector<10x128xbf16>, vector<128x256xbf16>, vector<10x256xf32> -> vector<10x256xf32>
    %62 = arith.addf %57, %61 : vector<10x256xf32>
    %63 = vector.extract_strided_slice %62 {offsets = [0, 0], sizes = [10, 128], strides = [1, 1]} : vector<10x256xf32> to vector<10x128xf32>
    %64 = vector.extract_strided_slice %62 {offsets = [0, 128], sizes = [10, 128], strides = [1, 1]} : vector<10x256xf32> to vector<10x128xf32>
    %65 = arith.maximumf %63, %64 : vector<10x128xf32>
    %c0_46 = arith.constant 0 : index
    %c0_47 = arith.constant 0 : index
    %66 = vector.load %arg5[%c0_46, %c0_47] : memref<1x128xf32, #tpu.memory_space<vmem>>, vector<1x128xf32>
    %67 = vector.broadcast %66 : vector<1x128xf32> to vector<10x128xf32>
    %68 = arith.addf %65, %67 : vector<10x128xf32>
    %cst_48 = arith.constant 0.000000e+00 : f32
    %69 = vector.broadcast %cst_48 : f32 to vector<10x128xf32>
    %70 = arith.maximumf %68, %69 : vector<10x128xf32>
    %c0_49 = arith.constant 0 : index
    %c0_50 = arith.constant 0 : index
    %71 = vector.load %arg14[%c0_49, %c0_50] : memref<10x128xf32, #tpu.memory_space<vmem>>, vector<10x128xf32>
    tpu.vector_store %arg14[%c0_49, %c0_50], %70 {strides = array<i32>} : memref<10x128xf32, #tpu.memory_space<vmem>>, vector<10x128xf32>,
    %c0_51 = arith.constant 0 : index
    %c0_52 = arith.constant 0 : index
    %72 = tpu.strided_load %arg14[%c0_51, %c0_52] {strides = array<i32: 2, 1>} : memref<10x128xf32, #tpu.memory_space<vmem>>, vector<5x128xf32>
    %c1_53 = arith.constant 1 : index
    %c0_54 = arith.constant 0 : index
    %73 = tpu.strided_load %arg14[%c1_53, %c0_54] {strides = array<i32: 2, 1>} : memref<10x128xf32, #tpu.memory_space<vmem>>, vector<5x128xf32>
    %74 = arith.maximumf %72, %73 : vector<5x128xf32>
    %75 = vector.extract_strided_slice %74 {offsets = [0, 0], sizes = [1, 128], strides = [1, 1]} : vector<5x128xf32> to vector<1x128xf32>
    %76 = vector.extract_strided_slice %74 {offsets = [1, 0], sizes = [1, 128], strides = [1, 1]} : vector<5x128xf32> to vector<1x128xf32>
    %77 = vector.extract_strided_slice %74 {offsets = [2, 0], sizes = [1, 128], strides = [1, 1]} : vector<5x128xf32> to vector<1x128xf32>
    %78 = vector.extract_strided_slice %74 {offsets = [3, 0], sizes = [1, 128], strides = [1, 1]} : vector<5x128xf32> to vector<1x128xf32>
    %79 = vector.extract_strided_slice %74 {offsets = [4, 0], sizes = [1, 128], strides = [1, 1]} : vector<5x128xf32> to vector<1x128xf32>
    %80 = tpu.concatenate %75, %76, %77, %78, %79 in 1 : vector<1x128xf32>, vector<1x128xf32>, vector<1x128xf32>, vector<1x128xf32>, vector<1x128xf32> -> vector<1x640xf32>
    %81 = arith.truncf %80 : vector<1x640xf32> to vector<1x640xbf16>
    %c0_55 = arith.constant 0 : index
    %c0_56 = arith.constant 0 : index
    %82 = vector.load %arg6[%c0_55, %c0_56] : memref<640x120xbf16, #tpu.memory_space<vmem>>, vector<640x120xbf16>
    %cst_57 = arith.constant dense<0.000000e+00> : vector<1x120xf32>
    %83 = tpu.matmul %81, %82, %cst_57 {dimension_numbers = #tpu.dot_dimension_numbers<[1], [0], [0], [1], [0, 0, 1, 1], [], []>} : vector<1x640xbf16>, vector<640x120xbf16>, vector<1x120xf32> -> vector<1x120xf32>
    %c0_58 = arith.constant 0 : index
    %c0_59 = arith.constant 0 : index
    %84 = vector.load %arg7[%c0_58, %c0_59] : memref<1x120xf32, #tpu.memory_space<vmem>>, vector<1x120xf32>
    %85 = arith.addf %83, %84 : vector<1x120xf32>
    %cst_60 = arith.constant 0.000000e+00 : f32
    %86 = vector.broadcast %cst_60 : f32 to vector<1x120xf32>
    %87 = arith.maximumf %85, %86 : vector<1x120xf32>
    %88 = arith.truncf %87 : vector<1x120xf32> to vector<1x120xbf16>
    %c0_61 = arith.constant 0 : index
    %c0_62 = arith.constant 0 : index
    %89 = vector.load %arg8[%c0_61, %c0_62] : memref<120x84xbf16, #tpu.memory_space<vmem>>, vector<120x84xbf16>
    %cst_63 = arith.constant dense<0.000000e+00> : vector<1x84xf32>
    %90 = tpu.matmul %88, %89, %cst_63 {dimension_numbers = #tpu.dot_dimension_numbers<[1], [0], [0], [1], [0, 0, 1, 1], [], []>} : vector<1x120xbf16>, vector<120x84xbf16>, vector<1x84xf32> -> vector<1x84xf32>
    %c0_64 = arith.constant 0 : index
    %c0_65 = arith.constant 0 : index
    %91 = vector.load %arg9[%c0_64, %c0_65] : memref<1x84xf32, #tpu.memory_space<vmem>>, vector<1x84xf32>
    %92 = arith.addf %90, %91 : vector<1x84xf32>
    %cst_66 = arith.constant 0.000000e+00 : f32
    %93 = vector.broadcast %cst_66 : f32 to vector<1x84xf32>
    %94 = arith.maximumf %92, %93 : vector<1x84xf32>
    %95 = arith.truncf %94 : vector<1x84xf32> to vector<1x84xbf16>
    %c0_67 = arith.constant 0 : index
    %c0_68 = arith.constant 0 : index
    %96 = vector.load %arg10[%c0_67, %c0_68] : memref<84x128xbf16, #tpu.memory_space<vmem>>, vector<84x128xbf16>
    %cst_69 = arith.constant dense<0.000000e+00> : vector<1x128xf32>
    %97 = tpu.matmul %95, %96, %cst_69 {dimension_numbers = #tpu.dot_dimension_numbers<[1], [0], [0], [1], [0, 0, 1, 1], [], []>} : vector<1x84xbf16>, vector<84x128xbf16>, vector<1x128xf32> -> vector<1x128xf32>
    %c0_70 = arith.constant 0 : index
    %c0_71 = arith.constant 0 : index
    %98 = vector.load %arg11[%c0_70, %c0_71] : memref<1x128xf32, #tpu.memory_space<vmem>>, vector<1x128xf32>
    %99 = arith.addf %97, %98 : vector<1x128xf32>
    %c0_72 = arith.constant 0 : index
    %c0_73 = arith.constant 0 : index
    %c0_74 = arith.constant 0 : index
    %100 = vector.load %arg12[%c0_72, %c0_73, %c0_74] : memref<1x1x128xf32, #tpu.memory_space<vmem>>, vector<1x1x128xf32>
    %101 = vector.shape_cast %100 : vector<1x1x128xf32> to vector<1x128xf32>
    %102 = vector.shape_cast %99 : vector<1x128xf32> to vector<1x1x128xf32>
    tpu.vector_store %arg12[%c0_72, %c0_73, %c0_74], %102 {strides = array<i32>} : memref<1x1x128xf32, #tpu.memory_space<vmem>>, vector<1x1x128xf32>,
    return
  }
  func.func @transform_0(%arg0: i32) -> (i32, i32, i32) {
    %c0_i32 = arith.constant 0 : i32
    %c0_i32_0 = arith.constant 0 : i32
    %c0_i32_1 = arith.constant 0 : i32
    return %arg0, %c0_i32, %c0_i32_0 : i32, i32, i32
  }
  func.func @transform_1(%arg0: i32) -> (i32, i32, i32) {
    %c0_i32 = arith.constant 0 : i32
    %c0_i32_0 = arith.constant 0 : i32
    %c0_i32_1 = arith.constant 0 : i32
    %c0_i32_2 = arith.constant 0 : i32
    return %c0_i32, %c0_i32_0, %c0_i32_1 : i32, i32, i32
  }
  func.func @transform_2(%arg0: i32) -> (i32, i32) {
    %c0_i32 = arith.constant 0 : i32
    %c0_i32_0 = arith.constant 0 : i32
    %c0_i32_1 = arith.constant 0 : i32
    return %c0_i32, %c0_i32_0 : i32, i32
  }
  func.func @transform_3(%arg0: i32) -> (i32, i32, i32) {
    %c0_i32 = arith.constant 0 : i32
    %c0_i32_0 = arith.constant 0 : i32
    %c0_i32_1 = arith.constant 0 : i32
    %c0_i32_2 = arith.constant 0 : i32
    return %c0_i32, %c0_i32_0, %c0_i32_1 : i32, i32, i32
  }
  func.func @transform_4(%arg0: i32) -> (i32, i32) {
    %c0_i32 = arith.constant 0 : i32
    %c0_i32_0 = arith.constant 0 : i32
    %c0_i32_1 = arith.constant 0 : i32
    return %c0_i32, %c0_i32_0 : i32, i32
  }
  func.func @transform_5(%arg0: i32) -> (i32, i32) {
    %c0_i32 = arith.constant 0 : i32
    %c0_i32_0 = arith.constant 0 : i32
    %c0_i32_1 = arith.constant 0 : i32
    return %c0_i32, %c0_i32_0 : i32, i32
  }
  func.func @transform_6(%arg0: i32) -> (i32, i32) {
    %c0_i32 = arith.constant 0 : i32
    %c0_i32_0 = arith.constant 0 : i32
    %c0_i32_1 = arith.constant 0 : i32
    return %c0_i32, %c0_i32_0 : i32, i32
  }
  func.func @transform_7(%arg0: i32) -> (i32, i32) {
    %c0_i32 = arith.constant 0 : i32
    %c0_i32_0 = arith.constant 0 : i32
    %c0_i32_1 = arith.constant 0 : i32
    return %c0_i32, %c0_i32_0 : i32, i32
  }
  func.func @transform_8(%arg0: i32) -> (i32, i32) {
    %c0_i32 = arith.constant 0 : i32
    %c0_i32_0 = arith.constant 0 : i32
    %c0_i32_1 = arith.constant 0 : i32
    return %c0_i32, %c0_i32_0 : i32, i32
  }
  func.func @transform_9(%arg0: i32) -> (i32, i32) {
    %c0_i32 = arith.constant 0 : i32
    %c0_i32_0 = arith.constant 0 : i32
    %c0_i32_1 = arith.constant 0 : i32
    return %c0_i32, %c0_i32_0 : i32, i32
  }
  func.func @transform_10(%arg0: i32) -> (i32, i32) {
    %c0_i32 = arith.constant 0 : i32
    %c0_i32_0 = arith.constant 0 : i32
    %c0_i32_1 = arith.constant 0 : i32
    return %c0_i32, %c0_i32_0 : i32, i32
  }
  func.func @transform_11(%arg0: i32) -> (i32, i32, i32) {
    %c0_i32 = arith.constant 0 : i32
    %c0_i32_0 = arith.constant 0 : i32
    %c0_i32_1 = arith.constant 0 : i32
    return %arg0, %c0_i32, %c0_i32_0 : i32, i32, i32
  }
}

</mosaic_0001>

<bundles_post_ra>
// kernel: laplace_ft_forward.1
= control target key start
LH: loop header
LB: loop body
LE: loop exit
PB: predicated region body
PF: predicated region fallthrough
CT: control target
= control target key end

     0   :  { %16 = vsyncpa [#allocation5], 0  ;;  %s4284_s0 = inlined_call_operand.vmem [shape: bf16[2,32,96], index: 0, kind: input, shape index: {}]   ;;  %s4285_s1 = inlined_call_operand.vmem [shape: bf16[5,96,256], index: 1, kind: input, shape index: {}]   ;;  %s4286_s2 = inlined_call_operand.vmem [shape: f32[1,128], index: 2, kind: input, shape index: {}]   ;;  %s4287_s3 = inlined_call_operand.vmem [shape: bf16[5,128,256], index: 3, kind: input, shape index: {}]   ;;  %s4288_s4 = inlined_call_operand.vmem [shape: f32[1,128], index: 4, kind: input, shape index: {}]   ;;  %s4289_s5 = inlined_call_operand.vmem [shape: bf16[640,120], index: 5, kind: input, shape index: {}]   ;;  %s4290_s6 = inlined_call_operand.vmem [shape: f32[1,120], index: 6, kind: input, shape index: {}]   ;;  %s4291_s7 = inlined_call_operand.vmem [shape: bf16[120,84], index: 7, kind: input, shape index: {}]   ;;  %s4292_s8 = inlined_call_operand.vmem [shape: f32[1,84], index: 8, kind: input, shape index: {}]   ;;  %s4293_s9 = inlined_call_operand.vmem [shape: bf16[84,128], index: 9, kind: input, shape index: {}]   ;;  %s4294_s10 = inlined_call_operand.vmem [shape: f32[1,128], index: 10, kind: input, shape index: {}]   ;;  %s4295_s11 = inlined_call_operand.hbm [shape: f32[2,1,128], index: 11, kind: output, shape index: {}]  }
   0x1   :  { %18 = vsyncpa [#allocation5 + $0x1], 0  ;;  %s3514_s17 = smov 0   ;;  %s3516_s18 = smov 0  }
   0x2   :  { %s3518_s19 = smov 0   ;;  %s3520_s20 = smov 0  }
   0x3 LB: > { %4300 = sst [smem:[#allocation7_spill]] %s3444_s19  ;;  %s3535_s21 = sadd.s32 4294967295, %s3448_s20   ;;  %s3448_s20 = sphi %s3520_s20, %s4307_s20   ;;  %s3444_s19 = sphi %s3518_s19, %s4309_s19   ;;  %s3440_s18 = sphi %s3516_s18, %s4311_s18   ;;  %s3436_s17 = sphi %s3514_s17, %s4310_s17  }
   0x4   : > { %s2623_s22 = sadd.s32 4294967294, %s3448_s20   ;;  %s3539_s23 = sadd.s32 1, %s3448_s20  }
   0x5   : > { %4301 = sst [smem:[#allocation8_spill]] %s3539_s23  ;;  %s267_s24 = sadd.s32 1, %s3444_s19 }
   0x6   : > { %s264_s25 = ssub.s32 %s3448_s20, %s3539_s23  ;;  %p277_p0 = scmp.ne.s32.totalorder %s3444_s19, %s3440_s18 }
   0x7   : > { %p265_p1 = scmp.eq.s32.totalorder %s264_s25, 0  ;;  %p278_p2 = scmp.eq.s32.totalorder %s3535_s21, 1 }
   0x8   : > { %p283_p3 = scmp.ne.s32.totalorder %s3440_s18, %s3436_s17  ;;  %p284_p4 = scmp.eq.s32.totalorder %s2623_s22, 1 }
   0x9   : > { %s3550_s26 = scalar_select %p265_p1, %s3444_s19, %s267_s24  }
   0xa   : > { %p3552_p5 = por %p278_p2, %p277_p0  ;;  %p3556_p6 = por %p284_p4, %p283_p3 }
   0xb   : > { %4302 = sst [smem:[#allocation9_spill]] %s3550_s26  ;;  %p2626_p7 = scmp.ge.s32.totalorder %s3448_s20, 1 }
   0xc   : > { %s4304_s28 = scalar_select %p3556_p6, 1, 0 }
   0xd   : > { %p340_p8 = scmp.lt.s32.totalorder %s3448_s20, 3 }
   0xe   : > { %4305 = sst [smem:[#allocation10_spill]] %s4304_s28 }
   0xf   : > { %p341_p9 = pnand %p2626_p7, %p340_p8 }
  0x10   : > { %p379_p10 = scmp.lt.s32.totalorder (!%p341_p9), %s3535_s21, 1  ;;  %s377_s23 = sand.u32 (!%p341_p9), 1, %s3440_s18  }
  0x11   : > { %344 = sbr.rel (%p341_p9) target bundleno = 1254 (0x4e6), region = 64  ;;  %s2951_s22 = sshll.u32 (!%p341_p9), %s3535_s21, 4 }
  0x12   : > { %s4243_s30 = scalar_lea.hbm (!%p341_p9), %s4295_s11, %s2951_s22  ;;  %s2556_s12 = scalar_lea.sflag (!%p341_p9), [#allocation5], %s377_s23 }
  0x16   : > { %v3122_v0 = vld [vmem:[%s4285_s1 + $0xb4] ss:$8 sps:$4 sm:$0xff]   ;;  %v3450_v2 = vmov 0   ;;  %v3126_v3 = vld [vmem:[%s4285_s1 + $0xb0] ss:$8 sps:$4 sm:$0xff]   ;;  %s380_s24 = scalar_select %p379_p10, %s3535_s21, 1 }
  0x17   : > { %v3124_v1 = vld [vmem:[%s4285_s1 + $0x54] ss:$8 sps:$4 sm:$0xff]   ;;  %539 = vmatprep.mubr.bf16.mxu0 %v3450_v2  ;;  %656 = vmatprep.mubr.bf16.mxu1 %v3450_v2  ;;  %v3127_v4 = vld [vmem:[%s4285_s1 + $0x50] ss:$8 sps:$4 sm:$0xff]   ;;  %v3128_v5 = vld [vmem:[%s4285_s1 + $0xa4] ss:$8 sps:$4 sm:$0xff]  }
  0x18   : > { %511 = vmatprep.subr.bf16.mxu0 %v3122_v0  ;;  %628 = vmatprep.subr.bf16.mxu1 %v3124_v1  ;;  %v3130_v6 = vld [vmem:[%s4285_s1 + $0x44] ss:$8 sps:$4 sm:$0xff]   ;;  %v3132_v7 = vld [vmem:[%s4285_s1 + $0xa0] ss:$8 sps:$4 sm:$0xff]   ;;  %v3134_v9 = vld [vmem:[%s4285_s1 + $0x94] ss:$8 sps:$4 sm:$0xff]  }
  0x19   : > { %512 = vmatpush1.bf16.msra.mxu0 %v3126_v3  ;;  %629 = vmatpush1.bf16.msra.mxu1 %v3127_v4  ;;  %v3133_v8 = vld [vmem:[%s4285_s1 + $0x40] ss:$8 sps:$4 sm:$0xff]   ;;  %v3136_v10 = vld [vmem:[%s4285_s1 + $0x34] ss:$8 sps:$4 sm:$0xff]   ;;  %v3138_v11 = vld [vmem:[%s4285_s1 + $0x90] ss:$8 sps:$4 sm:$0xff]  }
  0x1a   : > { %513 = vmatprep.subr.bf16.mxu0 %v3128_v5  ;;  %630 = vmatprep.subr.bf16.mxu1 %v3130_v6  ;;  %v3139_v12 = vld [vmem:[%s4285_s1 + $0x30] ss:$8 sps:$4 sm:$0xff]   ;;  %v3140_v13 = vld [vmem:[%s4285_s1 + $0x84] ss:$8 sps:$4 sm:$0xff]   ;;  %v3144_v15 = vld [vmem:[%s4285_s1 + $0x80] ss:$8 sps:$4 sm:$0xff]  }
  0x1b   : > { %v3142_v14 = vld [vmem:[%s4285_s1 + $0x24] ss:$8 sps:$4 sm:$0xff]   ;;  %s2954_s29 = sshll.u32 %s380_s24, 4  ;;  %v3145_v16 = vld [vmem:[%s4285_s1 + $0x20] ss:$8 sps:$4 sm:$0xff]   ;;  %vm500_vm1 = vcmask 785408  }
  0x1c   : > { %v3146_v17 = vld [vmem:[%s4285_s1 + $0x74] ss:$8 sps:$4 sm:$0xff]   ;;  %v3150_v19 = vld [vmem:[%s4285_s1 + $0x70] ss:$8 sps:$4 sm:$0xff]   ;;  %s383_s19 = scalar_lea.vmem %s4284_s0, %s2954_s29  ;;  %v3152_v21 = vld [vmem:[%s4285_s1 + $0x64] ss:$8 sps:$4 sm:$0xff]  }
  0x1d   : > { %514 = vmatpush1.bf16.msra.mxu0 %v3132_v7  ;;  %631 = vmatpush1.bf16.msra.mxu1 %v3133_v8  ;;  %v3148_v18 = vld [vmem:[%s4285_s1 + $0x14] ss:$8 sps:$4 sm:$0xff]   ;;  %v3151_v20 = vld [vmem:[%s4285_s1 + $0x10] ss:$8 sps:$4 sm:$0xff]   ;;  %v3154_v22 = vld [vmem:[%s4285_s1 + $0x4] ss:$8 sps:$4 sm:$0xff]  }
  0x1e   : > { %515 = vmatprep.subr.bf16.mxu0 %v3134_v9  ;;  %632 = vmatprep.subr.bf16.mxu1 %v3136_v10  ;;  %v3635_v23 = vld [vmem:[%s383_s19] sm:$0xff]   ;;  %v3637_v24 = vld [vmem:[%s383_s19 + $0x8] sm:$0xff]   ;;  %v3162_v30 = vld [vmem:[%s4285_s1 + $0x114] ss:$8 sps:$4 sm:$0xff]   ;;  %vm424_vm0 = vsmask.f32 7424 }
  0x1f   : > { %v3156_v25 = vld [vmem:[%s4285_s1 + $0x60] ss:$8 sps:$4 sm:$0xff]   ;;  %v426_v26 = vshrl.u32 %v3635_v23, 16  ;;  %v428_v27 = vshll.u32 %v3635_v23, 16  ;;  %v433_v28 = vshll.u32 %v3637_v24, 16  ;;  %v437_v42 = vshrl.u32 %v3637_v24, 16 }
  0x20   : > { %v3157_v29 = vld [vmem:[%s4285_s1] ss:$8 sps:$4 sm:$0xff]   ;;  %v3165_v33 = vld [vmem:[%s4285_s1 + $0x174] ss:$8 sps:$4 sm:$0xff]   ;;  %v3160_v35 = vld [vmem:[%s4285_s1 + $0x110] ss:$8 sps:$4 sm:$0xff]  }
  0x21   : > { %516 = vmatpush1.bf16.msra.mxu0 %v3138_v11  ;;  %633 = vmatpush1.bf16.msra.mxu1 %v3139_v12  ;;  %v430_v31 = vrot.slane %v428_v27, 1  ;;  %v435_v32 = vrot.slane %v433_v28, 1  ;;  %v3163_v36 = vld [vmem:[%s4285_s1 + $0x170] ss:$8 sps:$4 sm:$0xff]   ;;  %v3168_v37 = vld [vmem:[%s4285_s1 + $0x104] ss:$8 sps:$4 sm:$0xff]  }
  0x22   : > { %517 = vmatprep.subr.bf16.mxu0 %v3140_v13  ;;  %634 = vmatprep.subr.bf16.mxu1 %v3142_v14  ;;  %v3171_v39 = vld [vmem:[%s4285_s1 + $0x164] ss:$8 sps:$4 sm:$0xff]   ;;  %v3166_v40 = vld [vmem:[%s4285_s1 + $0x100] ss:$8 sps:$4 sm:$0xff]   ;;  %v3174_v43 = vld [vmem:[%s4285_s1 + $0xf4] ss:$8 sps:$4 sm:$0xff]  }
  0x23   : > { %v431_v34 = vor.u32 %v430_v31, %v426_v26  ;;  %v3169_v41 = vld [vmem:[%s4285_s1 + $0x160] ss:$8 sps:$4 sm:$0xff]   ;;  %v3177_v44 = vld [vmem:[%s4285_s1 + $0x154] ss:$8 sps:$4 sm:$0xff]   ;;  %v3172_v45 = vld [vmem:[%s4285_s1 + $0xf0] ss:$8 sps:$4 sm:$0xff]   ;;  %v439_v47 = vor.u32 %v437_v42, %v435_v32 }
  0x24   : > { %v3175_v46 = vld [vmem:[%s4285_s1 + $0x150] ss:$8 sps:$4 sm:$0xff]   ;;  %v3180_v48 = vld [vmem:[%s4285_s1 + $0xe4] ss:$8 sps:$4 sm:$0xff]   ;;  %v3178_v50 = vld [vmem:[%s4285_s1 + $0xe0] ss:$8 sps:$4 sm:$0xff]  }
  0x25   : > { %518 = vmatpush1.bf16.msra.mxu0 %v3144_v15  ;;  %635 = vmatpush1.bf16.msra.mxu1 %v3145_v16  ;;  %v436_v38 = vsel %vm424_vm0, %v431_v34, %v435_v32  ;;  %v3183_v49 = vld [vmem:[%s4285_s1 + $0x144] ss:$8 sps:$4 sm:$0xff]   ;;  %v3181_v51 = vld [vmem:[%s4285_s1 + $0x140] ss:$8 sps:$4 sm:$0xff]   ;;  %v3186_v52 = vld [vmem:[%s4285_s1 + $0xd4] ss:$8 sps:$4 sm:$0xff]  }
  0x26   : > { %519 = vmatprep.subr.bf16.mxu0 %v3146_v17  ;;  %636 = vmatprep.subr.bf16.mxu1 %v3148_v18  ;;  %v3189_v53 = vld [vmem:[%s4285_s1 + $0x134] ss:$8 sps:$4 sm:$0xff]   ;;  %v835_v54 = vrot.slane %v426_v26, 1  ;;  %v836_v55 = vrot.slane %v428_v27, 2  ;;  %v3184_v56 = vld [vmem:[%s4285_s1 + $0xd0] ss:$8 sps:$4 sm:$0xff]  }
  0x27   : > { %v3187_v57 = vld [vmem:[%s4285_s1 + $0x130] ss:$8 sps:$4 sm:$0xff]   ;;  %v839_v58 = vrot.slane %v433_v28, 2  ;;  %v838_v59 = vrot.slane %v437_v42, 1  ;;  %v3192_v60 = vld [vmem:[%s4285_s1 + $0xc4] ss:$8 sps:$4 sm:$0xff]  }
  0x28   : > { %v3195_v61 = vld [vmem:[%s4285_s1 + $0x124] ss:$8 sps:$4 sm:$0xff]   ;;  %v3190_v62 = vld [vmem:[%s4285_s1 + $0xc0] ss:$8 sps:$4 sm:$0xff]   ;;  %v3198_v0 = vld [vmem:[%s4285_s1 + $0x1d4] ss:$8 sps:$4 sm:$0xff]   ;;  %v837_v4 = vor.u32 %v836_v55, %v835_v54 }
  0x29   : > { %520 = vmatpush1.bf16.msra.mxu0 %v3150_v19  ;;  %637 = vmatpush1.bf16.msra.mxu1 %v3151_v20  ;;  %v3193_v63 = vld [vmem:[%s4285_s1 + $0x120] ss:$8 sps:$4 sm:$0xff]   ;;  %v691_v1 = vrot.slane %v3635_v23, 1  ;;  %v692_v3 = vrot.slane %v3637_v24, 1  ;;  %v840_v5 = vor.u32 %v839_v58, %v838_v59  ;;  %vm690_vm2 = vcmask 1046528   ;;  %s378_s19 = scalar_lea.vmem [#allocation4], %s377_s23 }
  0x2a   : > { %521 = vmatprep.subr.bf16.mxu0 %v3152_v21  ;;  %638 = vmatprep.subr.bf16.mxu1 %v3154_v22  ;;  %vm834_vm3 = vsmask.f32 6400  ;;  %v3196_v6 = vld [vmem:[%s4285_s1 + $0x1d0] ss:$8 sps:$4 sm:$0xff]   ;;  %v3201_v7 = vld [vmem:[%s4285_s1 + $0x1c4] ss:$8 sps:$4 sm:$0xff]  }
  0x2b   : > { %v693_v8 = vsel %vm690_vm2, %v691_v1, %v692_v3  ;;  %v841_v9 = vsel %vm834_vm3, %v837_v4, %v840_v5  ;;  %v3199_v10 = vld [vmem:[%s4285_s1 + $0x1c0] ss:$8 sps:$4 sm:$0xff]   ;;  %v3204_v11 = vld [vmem:[%s4285_s1 + $0x1b4] ss:$8 sps:$4 sm:$0xff]   ;;  %v3202_v12 = vld [vmem:[%s4285_s1 + $0x1b0] ss:$8 sps:$4 sm:$0xff]  }
  0x2c   : > { %v3207_v13 = vld [vmem:[%s4285_s1 + $0x1a4] ss:$8 sps:$4 sm:$0xff]   ;;  %v3205_v14 = vld [vmem:[%s4285_s1 + $0x1a0] ss:$8 sps:$4 sm:$0xff]   ;;  %v3210_v15 = vld [vmem:[%s4285_s1 + $0x194] ss:$8 sps:$4 sm:$0xff]  }
  0x2d   : > { %522 = vmatpush1.bf16.msra.mxu0 %v3156_v25  ;;  %639 = vmatpush1.bf16.msra.mxu1 %v3157_v29  ;;  %v3208_v16 = vld [vmem:[%s4285_s1 + $0x190] ss:$8 sps:$4 sm:$0xff]   ;;  %v3213_v17 = vld [vmem:[%s4285_s1 + $0x184] ss:$8 sps:$4 sm:$0xff]   ;;  %v3211_v18 = vld [vmem:[%s4285_s1 + $0x180] ss:$8 sps:$4 sm:$0xff]  }
  0x2e   : > { %764 = vmatprep.subr.bf16.mxu0 %v3162_v30  ;;  %912 = vmatprep.subr.bf16.mxu1 %v3165_v33  ;;  %v983_v19 = vrot.slane %v3635_v23, 2  ;;  %v984_v20 = vrot.slane %v3637_v24, 2  ;;  %vm982_vm4 = vcmask 1045504   ;;  %v3216_v22 = vld [vmem:[%s4287_s3 + $0x74] ss:$8 sps:$4 sm:$0xff]   ;;  %vm3452_vm5 = vmmov 0  }
  0x2f   : > { %v3217_v25 = vld [vmem:[%s4287_s3 + $0x60] ss:$8 sps:$4 sm:$0xff]   ;;  %v3222_v26 = vld [vmem:[%s4287_s3 + $0xf4] ss:$8 sps:$4 sm:$0xff]   ;;  %v3220_v27 = vld [vmem:[%s4287_s3 + $0xf0] ss:$8 sps:$4 sm:$0xff]  }
  0x30   : > { %2655 = vmatmul.mubr.msk.bf16.vlgmr.msra.gmra.mxu0 %vm500_vm1, %v436_v38  ;;  %2669 = vmatmul.mubr.msk.bf16.vlgmr.msra.gmra.mxu1 %vm500_vm1, %v3635_v23  ;;  %v985_v21 = vsel %vm982_vm4, %v983_v19, %v984_v20  ;;  %v3214_v23 = vld [vmem:[%s4287_s3 + $0x70] ss:$8 sps:$4 sm:$0xff]   ;;  %v3225_v28 = vld [vmem:[%s4287_s3 + $0x54] ss:$8 sps:$4 sm:$0xff]   ;;  %v3228_v30 = vld [vmem:[%s4287_s3 + $0xe4] ss:$8 sps:$4 sm:$0xff]  }
  0x31   : > { %765 = vmatpush1.bf16.msra.mxu0 %v3160_v35  ;;  %913 = vmatpush1.bf16.msra.mxu1 %v3163_v36  ;;  %v3223_v29 = vld [vmem:[%s4287_s3 + $0x50] ss:$8 sps:$4 sm:$0xff]   ;;  %v3226_v31 = vld [vmem:[%s4287_s3 + $0xe0] ss:$8 sps:$4 sm:$0xff]   ;;  %v3231_v32 = vld [vmem:[%s4287_s3 + $0x44] ss:$8 sps:$4 sm:$0xff]  }
  0x32   : > { %766 = vmatprep.subr.bf16.mxu0 %v3168_v37  ;;  %914 = vmatprep.subr.bf16.mxu1 %v3171_v39  ;;  %v3229_v33 = vld [vmem:[%s4287_s3 + $0x40] ss:$8 sps:$4 sm:$0xff]   ;;  %v3234_v34 = vld [vmem:[%s4287_s3 + $0xd4] ss:$8 sps:$4 sm:$0xff]   ;;  %v3232_v35 = vld [vmem:[%s4287_s3 + $0xd0] ss:$8 sps:$4 sm:$0xff]  }
  0x33   : > { %549 = vmatprep.mubr.bf16.mxu0 %v3450_v2  ;;  %666 = vmatprep.mubr.bf16.mxu1 %v3450_v2  ;;  %v3237_v36 = vld [vmem:[%s4287_s3 + $0x34] ss:$8 sps:$4 sm:$0xff]   ;;  %v3235_v37 = vld [vmem:[%s4287_s3 + $0x30] ss:$8 sps:$4 sm:$0xff]   ;;  %v3240_v38 = vld [vmem:[%s4287_s3 + $0xc4] ss:$8 sps:$4 sm:$0xff]  }
  0x34   : > { %v3238_v39 = vld [vmem:[%s4287_s3 + $0xc0] ss:$8 sps:$4 sm:$0xff]   ;;  %v3246_v42 = vld [vmem:[%s4287_s3 + $0xb4] ss:$8 sps:$4 sm:$0xff]   ;;  %vm2415_vm6 = vcmask 1043456   ;;  %vm2510_vm7 = vcmask 1041408  }
  0x35   : > { %767 = vmatpush1.bf16.msra.mxu0 %v3166_v40  ;;  %915 = vmatpush1.bf16.msra.mxu1 %v3169_v41  ;;  %v3243_v40 = vld [vmem:[%s4287_s3 + $0x24] ss:$8 sps:$4 sm:$0xff]   ;;  %v3241_v41 = vld [vmem:[%s4287_s3 + $0x20] ss:$8 sps:$4 sm:$0xff]   ;;  %v3270_v55 = vld [vmem:[%s4287_s3 + $0x174] ss:$8 sps:$4 sm:$0xff]  }
  0x36   : > { %768 = vmatprep.subr.bf16.mxu0 %v3174_v43  ;;  %916 = vmatprep.subr.bf16.mxu1 %v3177_v44  ;;  %v3244_v43 = vld [vmem:[%s4287_s3 + $0xb0] ss:$8 sps:$4 sm:$0xff]   ;;  %v3262_v54 = vld [vmem:[%s4287_s3 + $0x80] ss:$8 sps:$4 sm:$0xff]   ;;  %vm2411_vm8 = vcmask 982016   ;;  %vm2506_vm9 = vcmask 687104  }
  0x37   : > { %v3247_v44 = vld [vmem:[%s4287_s3 + $0x10] ss:$8 sps:$4 sm:$0xff]   ;;  %s2568_s26 = sshll.u32 %s378_s19, 4  ;;  %s3453_s21 = smov [#allocation4]   ;;  %s4245_s26 = int_to_ptr.vmem [resolvable:$true] %s2568_s26 }
  0x38   : > { %2656 = vmatmul.mubr.msk.bf16.gmra.mxu0 %vm500_vm1, %v439_v47  ;;  %2670 = vmatmul.mubr.msk.bf16.gmra.mxu1 %vm500_vm1, %v3637_v24  ;;  %v3219_v24 = vld [vmem:[%s4287_s3 + $0x64] ss:$8 sps:$4 sm:$0xff]   ;;  %v3250_v47 = vld [vmem:[%s4287_s3 + $0xa0] ss:$8 sps:$4 sm:$0xff]   ;;  %s3388_s13 = scalar_lea.vmem %s4245_s26, 16  ;;  %s3392_s14 = sshll.u32 %s3453_s21, 4  ;;  %s3393_s14 = int_to_ptr.vmem [resolvable:$false] %s3392_s14 }
  0x39   : > { %769 = vmatpush1.bf16.msra.mxu0 %v3172_v45  ;;  %917 = vmatpush1.bf16.msra.mxu1 %v3175_v46  ;;  %v3249_v45 = vld [vmem:[%s4287_s3 + $0x14] ss:$8 sps:$4 sm:$0xff]   ;;  %v3252_v46 = vld [vmem:[%s4287_s3 + $0xa4] ss:$8 sps:$4 sm:$0xff]   ;;  %p3389_p11 = scmp.ne.s32.totalorder %s4245_s26, %s3388_s13  ;;  %s3394_s29 = scalar_lea.vmem %s3393_s14, 32 }
  0x3a   : > { %770 = vmatprep.subr.bf16.mxu0 %v3180_v48  ;;  %918 = vmatprep.subr.bf16.mxu1 %v3183_v49  ;;  %v3255_v48 = vld [vmem:[%s4287_s3 + $0x4] ss:$8 sps:$4 sm:$0xff]   ;;  %v3258_v49 = vld [vmem:[%s4287_s3 + $0x94] ss:$8 sps:$4 sm:$0xff]   ;;  %p3395_p0 = scmp.lt.s32.totalorder %s4245_s26, %s3393_s14  ;;  %p3396_p1 = scmp.lt.s32.totalorder %s3394_s29, %s3388_s13 }
  0x3b   : > { %792 = vmatprep.mubr.bf16.mxu0 %v3450_v2  ;;  %940 = vmatprep.mubr.bf16.mxu1 %v3450_v2  ;;  %p3390_p12 = pnand %p3389_p11, %p3552_p5 }
  0x3c   : > { %p3397_p2 = por %p3396_p1, %p3395_p0 }
  0x3d   : > { %771 = vmatpush1.bf16.msra.mxu0 %v3178_v50  ;;  %919 = vmatpush1.bf16.msra.mxu1 %v3181_v51  ;;  %v3253_v50 = vld [vmem:[%s4287_s3] ss:$8 sps:$4 sm:$0xff]   ;;  %v3261_v51 = vld [vmem:[%s4287_s3 + $0x1f4] ss:$8 sps:$4 sm:$0xff]   ;;  %p3391_p13 = pneg %p3390_p12 }
  0x3e   : > { %772 = vmatprep.subr.bf16.mxu0 %v3186_v52  ;;  %920 = vmatprep.subr.bf16.mxu1 %v3189_v53  ;;  %v3256_v52 = vld [vmem:[%s4287_s3 + $0x90] ss:$8 sps:$4 sm:$0xff]   ;;  %v3264_v53 = vld [vmem:[%s4287_s3 + $0x84] ss:$8 sps:$4 sm:$0xff]  }
  0x3f   : > { %p3398_p3 = pnand %p3397_p2, %p3391_p13 }
  0x41   : > { %773 = vmatpush1.bf16.msra.mxu0 %v3184_v56  ;;  %921 = vmatpush1.bf16.msra.mxu1 %v3187_v57 }
  0x42   : > { %774 = vmatprep.subr.bf16.mxu0 %v3192_v60  ;;  %922 = vmatprep.subr.bf16.mxu1 %v3195_v61 }
  0x45   : > { %775 = vmatpush1.bf16.msra.mxu0 %v3190_v62  ;;  %923 = vmatpush1.bf16.msra.mxu1 %v3193_v63 }
  0x46   : > { %1056 = vmatprep.subr.bf16.mxu0 %v3198_v0  ;;  %1267 = vmatprep.subr.bf16.mxu1 %v3222_v26 }
  0x48   : > { %2695 = vmatmul.mubr.msk.bf16.vlgmr.msra.gmra.mxu0 %vm500_vm1, %v693_v8  ;;  %2721 = vmatmul.mubr.msk.bf16.vlgmr.msra.gmra.mxu1 %vm500_vm1, %v841_v9 }
  0x49   : > { %1057 = vmatpush1.bf16.msra.mxu0 %v3196_v6  ;;  %802 = vmatprep.mubr.bf16.mxu0 %v3450_v2 }
  0x4a   : > { %1058 = vmatprep.subr.bf16.mxu0 %v3201_v7  ;;  %950 = vmatprep.mubr.bf16.mxu1 %v3450_v2 }
  0x4b   : > { %1268 = vmatpush1.bf16.msra.mxu1 %v3220_v27 }
  0x4c   : > { %1269 = vmatprep.subr.bf16.mxu1 %v3228_v30 }
  0x4d   : > { %1059 = vmatpush1.bf16.msra.mxu0 %v3199_v10 }
  0x4e   : > { %1060 = vmatprep.subr.bf16.mxu0 %v3204_v11 }
  0x4f   : > { %1270 = vmatpush1.bf16.msra.mxu1 %v3226_v31 }
  0x50   : > { %2696 = vmatmul.mubr.msk.bf16.gmra.mxu0 %vm500_vm1, %v692_v3  ;;  %2722 = vmatmul.mubr.msk.bf16.gmra.mxu1 %vm500_vm1, %v840_v5 }
  0x51   : > { %1061 = vmatpush1.bf16.msra.mxu0 %v3202_v12  ;;  %1084 = vmatprep.mubr.bf16.mxu0 %v3450_v2 }
  0x52   : > { %1062 = vmatprep.subr.bf16.mxu0 %v3207_v13  ;;  %1299 = vmatprep.mubr.bf16.mxu1 %v3450_v2 }
  0x53   : > { %1271 = vmatprep.subr.bf16.mxu1 %v3234_v34 }
  0x54   : > { %1272 = vmatpush1.bf16.msra.mxu1 %v3232_v35 }
  0x55   : > { %1063 = vmatpush1.bf16.msra.mxu0 %v3205_v14  ;;  %1273 = vmatprep.subr.bf16.mxu1 %v3240_v38 }
  0x56   : > { %1064 = vmatprep.subr.bf16.mxu0 %v3210_v15 }
  0x58   : > { %1274 = vmatpush1.bf16.msra.mxu1 %v3238_v39 }
  0x59   : > { %1065 = vmatpush1.bf16.msra.mxu0 %v3208_v16  ;;  %1275 = vmatprep.subr.bf16.mxu1 %v3246_v42 }
  0x5a   : > { %1066 = vmatprep.subr.bf16.mxu0 %v3213_v17 }
  0x5c   : > { %1276 = vmatpush1.bf16.msra.mxu1 %v3244_v43 }
  0x5d   : > { %1067 = vmatpush1.bf16.msra.mxu0 %v3211_v18  ;;  %1277 = vmatprep.subr.bf16.mxu1 %v3252_v46 }
  0x5e   : > { %1390 = vmatprep.subr.bf16.mxu0 %v3216_v22 }
  0x60   : > { %2747 = vmatmul.mubr.msk.bf16.vlgmr.msra.gmra.mxu0 %vm500_vm1, %v985_v21  ;;  %1278 = vmatpush1.bf16.msra.mxu1 %v3250_v47 }
  0x61   : > { %1094 = vmatprep.mubr.bf16.mxu0 %v3450_v2  ;;  %1391 = vmatpush1.bf16.msra.mxu0 %v3214_v23 }
  0x62   : > { %1392 = vmatprep.subr.bf16.mxu0 %v3219_v24  ;;  %1279 = vmatprep.subr.bf16.mxu1 %v3258_v49 }
  0x64   : > { %1280 = vmatpush1.bf16.msra.mxu1 %v3256_v52 }
  0x65   : > { %1393 = vmatpush1.bf16.msra.mxu0 %v3217_v25  ;;  %1281 = vmatprep.subr.bf16.mxu1 %v3264_v53 }
  0x66   : > { %1394 = vmatprep.subr.bf16.mxu0 %v3225_v28 }
  0x68   : > { %2748 = vmatmul.mubr.msk.bf16.gmra.mxu0 %vm500_vm1, %v984_v20  ;;  %1282 = vmatpush1.bf16.msra.mxu1 %v3262_v54 }
  0x69   : > { %1422 = vmatprep.mubr.bf16.mxu0 %v3450_v2  ;;  %1395 = vmatpush1.bf16.msra.mxu0 %v3223_v29 }
  0x6a   : > { %1396 = vmatprep.subr.bf16.mxu0 %v3231_v32  ;;  %1533 = vmatprep.subr.bf16.mxu1 %v3270_v55 }
  0x6d   : > { %1397 = vmatpush1.bf16.msra.mxu0 %v3229_v33 }
  0x6e   : > { %1398 = vmatprep.subr.bf16.mxu0 %v3237_v36 }
  0x71   : > { %1399 = vmatpush1.bf16.msra.mxu0 %v3235_v37 }
  0x72   : > { %1400 = vmatprep.subr.bf16.mxu0 %v3243_v40  ;;  %v2749_v40 = vld [vmem:[%s4286_s2] ss:$0 sm:$0xff] }
  0x75   : > { %1401 = vmatpush1.bf16.msra.mxu0 %v3241_v41 }
  0x76   : > { %1402 = vmatprep.subr.bf16.mxu0 %v3249_v45 }
  0x79   : > { %1403 = vmatpush1.bf16.msra.mxu0 %v3247_v44 }
  0x7a   : > { %1404 = vmatprep.subr.bf16.mxu0 %v3255_v48 }
  0x7d   : > { %1405 = vmatpush1.bf16.msra.mxu0 %v3253_v50 }
  0x7e   : > { %1681 = vmatprep.subr.bf16.mxu0 %v3261_v51 }
  0xf0   : > { %v541_v56 = vpop.f32.mrf.mxu0  ;;  %v658_v57 = vpop.f32.mrf.mxu1 }
  0xf1   : > { %v659_v20 = vadd.f32 %v658_v57, %v541_v56 }
  0xf2   : > { %v543_v58 = vpop.f32.mrf.mxu0  ;;  %v660_v60 = vpop.f32.mrf.mxu1 }
  0xf3   : > { %v661_v21 = vadd.f32 %v660_v60, %v543_v58 }
  0xf4   : > { %v545_v59 = vpop.f32.mrf.mxu0  ;;  %v662_v62 = vpop.f32.mrf.mxu1 }
  0xf5   : > { %v663_v26 = vadd.f32 %v662_v62, %v545_v59 }
  0xf6   : > { %v547_v61 = vpop.f32.mrf.mxu0  ;;  %v664_v0 = vpop.f32.mrf.mxu1 }
  0xf7   : > { %v665_v27 = vadd.f32 %v664_v0, %v547_v61 }
  0xf8   : > { %v551_v63 = vpop.f32.mrf.mxu0  ;;  %v668_v3 = vpop.f32.mrf.mxu1 }
  0xf9   : > { %v669_v33 = vadd.f32 %v668_v3, %v551_v63 }
  0xfa   : > { %v553_v1 = vpop.f32.mrf.mxu0  ;;  %v670_v5 = vpop.f32.mrf.mxu1 }
  0xfb   : > { %v671_v36 = vadd.f32 %v670_v5, %v553_v1 }
  0xfc   : > { %v555_v4 = vpop.f32.mrf.mxu0  ;;  %v672_v7 = vpop.f32.mrf.mxu1 }
  0xfd   : > { %v673_v46 = vadd.f32 %v672_v7, %v555_v4 }
  0xfe   : > { %v557_v6 = vpop.f32.mrf.mxu0  ;;  %v674_v10 = vpop.f32.mrf.mxu1 }
  0xff   : > { %v675_v49 = vadd.f32 %v674_v10, %v557_v6 }
 0x108   : > { %v794_v8 = vpop.f32.mrf.mxu0  ;;  %v942_v12 = vpop.f32.mrf.mxu1 }
 0x109   : > { %v813_v22 = vadd.f32 %v794_v8, %v659_v20 }
 0x10a   : > { %v796_v9 = vpop.f32.mrf.mxu0  ;;  %v944_v14 = vpop.f32.mrf.mxu1 }
 0x10b   : > { %v814_v23 = vadd.f32 %v796_v9, %v661_v21  ;;  %v961_v29 = vadd.f32 %v942_v12, %v813_v22  ;;  %v3259_v21 = vld [vmem:[%s4287_s3 + $0x1f0] ss:$8 sps:$4 sm:$0xff]  }
 0x10c   : > { %v798_v11 = vpop.f32.mrf.mxu0  ;;  %v946_v16 = vpop.f32.mrf.mxu1 }
 0x10d   : > { %v815_v30 = vadd.f32 %v798_v11, %v663_v26  ;;  %v962_v31 = vadd.f32 %v944_v14, %v814_v23  ;;  %v3267_v23 = vld [vmem:[%s4287_s3 + $0x1e4] ss:$8 sps:$4 sm:$0xff]  }
 0x10e   : > { %v800_v13 = vpop.f32.mrf.mxu0  ;;  %v948_v18 = vpop.f32.mrf.mxu1 }
 0x10f   : > { %v816_v32 = vadd.f32 %v800_v13, %v665_v27  ;;  %v963_v42 = vadd.f32 %v946_v16, %v815_v30 }
 0x110   : > { %v804_v15 = vpop.f32.mrf.mxu0  ;;  %v952_v24 = vpop.f32.mrf.mxu1 }
 0x111   : > { %v817_v39 = vadd.f32 %v804_v15, %v669_v33  ;;  %v964_v43 = vadd.f32 %v948_v18, %v816_v32  ;;  %v3271_v32 = vld [vmem:[%s4287_s3 + $0x1d0] ss:$8 sps:$4 sm:$0xff]   ;;  %v3279_v33 = vld [vmem:[%s4287_s3 + $0x1c4] ss:$8 sps:$4 sm:$0xff]  }
 0x112   : > { %v806_v17 = vpop.f32.mrf.mxu0  ;;  %v954_v34 = vpop.f32.mrf.mxu1 }
 0x113   : > { %v818_v44 = vadd.f32 %v806_v17, %v671_v36  ;;  %v965_v53 = vadd.f32 %v952_v24, %v817_v39  ;;  %v3277_v36 = vld [vmem:[%s4287_s3 + $0x1c0] ss:$8 sps:$4 sm:$0xff]   ;;  %v3288_v39 = vld [vmem:[%s4287_s3 + $0x144] ss:$8 sps:$4 sm:$0xff]  }
 0x114   : > { %v808_v19 = vpop.f32.mrf.mxu0  ;;  %v956_v47 = vpop.f32.mrf.mxu1 }
 0x115   : > { %v819_v54 = vadd.f32 %v808_v19, %v673_v46  ;;  %v966_v56 = vadd.f32 %v954_v34, %v818_v44  ;;  %v3274_v34 = vld [vmem:[%s4287_s3 + $0x160] ss:$8 sps:$4 sm:$0xff]   ;;  %v3292_v46 = vld [vmem:[%s4287_s3 + $0x130] ss:$8 sps:$4 sm:$0xff]  }
 0x116   : > { %v810_v25 = vpop.f32.mrf.mxu0  ;;  %v958_v60 = vpop.f32.mrf.mxu1  ;;  %v3289_v44 = vld [vmem:[%s4287_s3 + $0x1a0] ss:$8 sps:$4 sm:$0xff]  }
 0x117   : > { %v820_v57 = vadd.f32 %v810_v25, %v675_v49  ;;  %v967_v3 = vadd.f32 %v956_v47, %v819_v54  ;;  %v3265_v25 = vld [vmem:[%s4287_s3 + $0x1e0] ss:$8 sps:$4 sm:$0xff]   ;;  %v3300_v47 = vld [vmem:[%s4287_s3 + $0x124] ss:$8 sps:$4 sm:$0xff]  }
 0x118   : > { %v3303_v49 = vld [vmem:[%s4287_s3 + $0x184] ss:$8 sps:$4 sm:$0xff]  }
 0x119   : > { %v968_v4 = vadd.f32 %v958_v60, %v820_v57  ;;  %v3310_v60 = vld [vmem:[%s4287_s3 + $0x270] ss:$8 sps:$4 sm:$0xff]  }
 0x120   : > { %v1086_v28 = vpop.f32.mrf.mxu0 }
 0x121   : > { %v1105_v37 = vadd.f32 %v1086_v28, %v961_v29  ;;  %v3273_v28 = vld [vmem:[%s4287_s3 + $0x1d4] ss:$8 sps:$4 sm:$0xff]   ;;  %v3268_v29 = vld [vmem:[%s4287_s3 + $0x170] ss:$8 sps:$4 sm:$0xff]  }
 0x122   : > { %v1088_v35 = vpop.f32.mrf.mxu0 }
 0x123   : > { %v1106_v38 = vadd.f32 %v1088_v35, %v962_v31  ;;  %v3276_v31 = vld [vmem:[%s4287_s3 + $0x164] ss:$8 sps:$4 sm:$0xff]   ;;  %v3282_v35 = vld [vmem:[%s4287_s3 + $0x154] ss:$8 sps:$4 sm:$0xff]  }
 0x124   : > { %v1090_v41 = vpop.f32.mrf.mxu0 }
 0x125   : > { %v1113_v45 = vmax.f32 %v1105_v37, %v1106_v38  ;;  %v1107_v51 = vadd.f32 %v1090_v41, %v963_v42  ;;  %v3285_v37 = vld [vmem:[%s4287_s3 + $0x1b4] ss:$8 sps:$4 sm:$0xff]   ;;  %v3280_v38 = vld [vmem:[%s4287_s3 + $0x150] ss:$8 sps:$4 sm:$0xff]   ;;  %v3291_v41 = vld [vmem:[%s4287_s3 + $0x1a4] ss:$8 sps:$4 sm:$0xff]  }
 0x126   : > { %v1092_v48 = vpop.f32.mrf.mxu0  ;;  %v3286_v42 = vld [vmem:[%s4287_s3 + $0x140] ss:$8 sps:$4 sm:$0xff]  }
 0x127   : > { %v1124_v50 = vadd.f32 %v2749_v40, %v1113_v45  ;;  %v1108_v52 = vadd.f32 %v1092_v48, %v964_v43  ;;  %v3294_v43 = vld [vmem:[%s4287_s3 + $0x134] ss:$8 sps:$4 sm:$0xff]   ;;  %v3295_v48 = vld [vmem:[%s4287_s3 + $0x190] ss:$8 sps:$4 sm:$0xff]  }
 0x128   : > { %v1096_v55 = vpop.f32.mrf.mxu0  ;;  %v3297_v45 = vld [vmem:[%s4287_s3 + $0x194] ss:$8 sps:$4 sm:$0xff]  }
 0x129   : > { %v1128_v58 = vmax.f32 %v1124_v50, 0.0  ;;  %v1114_v59 = vmax.f32 %v1107_v51, %v1108_v52  ;;  %v1109_v63 = vadd.f32 %v1096_v55, %v965_v53  ;;  %v3298_v50 = vld [vmem:[%s4287_s3 + $0x120] ss:$8 sps:$4 sm:$0xff]   ;;  %v3306_v51 = vld [vmem:[%s4287_s3 + $0x114] ss:$8 sps:$4 sm:$0xff]  }
 0x12a   : > { %v1098_v61 = vpop.f32.mrf.mxu0  ;;  %v3301_v52 = vld [vmem:[%s4287_s3 + $0x180] ss:$8 sps:$4 sm:$0xff]   ;;  %v3304_v55 = vld [vmem:[%s4287_s3 + $0x110] ss:$8 sps:$4 sm:$0xff]  }
 0x12b   : > { %1132 = vst [vmem:[#allocation2] sm:$0xff] %v1128_v58  ;;  %v1125_v62 = vadd.f32 %v2749_v40, %v1114_v59  ;;  %v1110_v0 = vadd.f32 %v1098_v61, %v966_v56  ;;  %v3309_v56 = vld [vmem:[%s4287_s3 + $0x104] ss:$8 sps:$4 sm:$0xff]   ;;  %v3307_v58 = vld [vmem:[%s4287_s3 + $0x100] ss:$8 sps:$4 sm:$0xff]  }
 0x12c   : > { %v1100_v1 = vpop.f32.mrf.mxu0  ;;  %v3312_v59 = vld [vmem:[%s4287_s3 + $0x274] ss:$8 sps:$4 sm:$0xff]  }
 0x12d   : > { %v1129_v5 = vmax.f32 %v1125_v62, 0.0  ;;  %v1115_v6 = vmax.f32 %v1109_v63, %v1110_v0  ;;  %v1111_v9 = vadd.f32 %v1100_v1, %v967_v3  ;;  %v3315_v62 = vld [vmem:[%s4287_s3 + $0x264] ss:$8 sps:$4 sm:$0xff]   ;;  %v3313_v63 = vld [vmem:[%s4287_s3 + $0x260] ss:$8 sps:$4 sm:$0xff]  }
 0x12e   : > { %v1102_v7 = vpop.f32.mrf.mxu0  ;;  %v3318_v0 = vld [vmem:[%s4287_s3 + $0x254] ss:$8 sps:$4 sm:$0xff]   ;;  %v3316_v1 = vld [vmem:[%s4287_s3 + $0x250] ss:$8 sps:$4 sm:$0xff]   ;;  %v3321_v3 = vld [vmem:[%s4287_s3 + $0x244] ss:$8 sps:$4 sm:$0xff]  }
 0x12f   : > { %1133 = vst [vmem:[#allocation2 + $0x8] sm:$0xff] %v1129_v5  ;;  %v1126_v8 = vadd.f32 %v2749_v40, %v1115_v6  ;;  %v1112_v10 = vadd.f32 %v1102_v7, %v968_v4  ;;  %v3324_v4 = vld [vmem:[%s4287_s3 + $0x234] ss:$8 sps:$4 sm:$0xff]   ;;  %v3322_v5 = vld [vmem:[%s4287_s3 + $0x230] ss:$8 sps:$4 sm:$0xff]  }
 0x130   : > { %v3327_v6 = vld [vmem:[%s4287_s3 + $0x224] ss:$8 sps:$4 sm:$0xff]   ;;  %v3325_v7 = vld [vmem:[%s4287_s3 + $0x220] ss:$8 sps:$4 sm:$0xff]  }
 0x131   : > { %v1130_v11 = vmax.f32 %v1126_v8, 0.0  ;;  %v1116_v12 = vmax.f32 %v1111_v9, %v1112_v10  ;;  %v3330_v8 = vld [vmem:[%s4287_s3 + $0x214] ss:$8 sps:$4 sm:$0xff]   ;;  %v3328_v9 = vld [vmem:[%s4287_s3 + $0x210] ss:$8 sps:$4 sm:$0xff]  }
 0x132   : > { %v3333_v10 = vld [vmem:[%s4287_s3 + $0x204] ss:$8 sps:$4 sm:$0xff]  }
 0x133   : > { %1134 = vst [vmem:[#allocation2 + $0x10] sm:$0xff] %v1130_v11  ;;  %v1127_v13 = vadd.f32 %v2749_v40, %v1116_v12  ;;  %v3283_v40 = vld [vmem:[%s4287_s3 + $0x1b0] ss:$8 sps:$4 sm:$0xff]   ;;  %v3331_v11 = vld [vmem:[%s4287_s3 + $0x200] ss:$8 sps:$4 sm:$0xff]  }
 0x135   : > { %v1131_v14 = vmax.f32 %v1127_v13, 0.0  ;;  %v3334_v13 = vld [vmem:[%s4289_s5 + $0x78] sm:$0xff]  }
 0x136   : > { %v1136_v15 = vld [vmem:[#allocation2] ss:$2 sm:$0xff]  ;;  %v1140_v16 = vld [vmem:[#allocation2 + $0x1] ss:$2 sm:$0xff] }
 0x137   : > { %1135 = vst [vmem:[#allocation2 + $0x18] sm:$0xf] %v1131_v14  ;;  %v1143_v19 = vmax.f32 %v1136_v15, %v1140_v16  ;;  %v3335_v14 = vld [vmem:[%s4289_s5 + $0x38] sm:$0xff]  }
 0x138   : > { %v3336_v15 = vld [vmem:[%s4289_s5 + $0xf8] sm:$0xff]  }
 0x139   : > { %v3337_v16 = vld [vmem:[%s4289_s5 + $0xb8] sm:$0xff]  }
 0x13e   : > { %v1138_v17 = vld [vmem:[#allocation2 + $0x10] ss:$2 sm:$0x3f]  ;;  %v1142_v18 = vld [vmem:[#allocation2 + $0x11] ss:$2 sm:$0x3f] }
 0x13f   : > { %v1144_v20 = vmax.f32 %v1138_v17, %v1142_v18  ;;  %v3338_v17 = vld [vmem:[%s4289_s5 + $0x70] sm:$0xff]  }
 0x140   : > { %v3339_v18 = vld [vmem:[%s4289_s5 + $0x30] sm:$0xff]  }
 0x141   : > { %v3891_v22 = vpack.c.bf16 %v1144_v20, %v1143_v19  ;;  %v3340_v19 = vld [vmem:[%s4289_s5 + $0xf0] sm:$0xff]  }
 0x142   : > { %v3341_v20 = vld [vmem:[%s4289_s5 + $0xb0] sm:$0xff]  }
 0x143   : > { %1423 = vmatmul.mubr.bf16.vlgmr.msra.gmra.mxu0 %v3891_v22  ;;  %v1182_v24 = vshll.u32 %v3891_v22, 16  ;;  %v1180_v26 = vshrl.u32 %v3891_v22, 16  ;;  %v1451_v61 = vrot.slane %v3891_v22, 1  ;;  %v1745_v12 = vrot.slane %v3891_v22, 2  ;;  %v3343_v22 = vld [vmem:[%s4289_s5 + $0x28] sm:$0xff]  }
 0x144   : > { %1682 = vmatpush1.bf16.msra.mxu0 %v3259_v21  ;;  %1713 = vmatprep.mubr.bf16.mxu0 %v3450_v2  ;;  %v3342_v21 = vld [vmem:[%s4289_s5 + $0x68] sm:$0xff]  }
 0x145   : > { %1683 = vmatprep.subr.bf16.mxu0 %v3267_v23  ;;  %v1184_v27 = vrot.slane %v1182_v24, 1  ;;  %v1597_v53 = vrot.slane %v1180_v26, 1  ;;  %v1598_v54 = vrot.slane %v1182_v24, 2  ;;  %v3344_v23 = vld [vmem:[%s4289_s5 + $0xe8] sm:$0xff]  }
 0x146   : > { %v3345_v24 = vld [vmem:[%s4289_s5 + $0xa8] sm:$0xff]  }
 0x147   : > { %v1185_v30 = vor.u32 %v1184_v27, %v1180_v26  ;;  %v1599_v57 = vor.u32 %v1598_v54, %v1597_v53  ;;  %v3347_v26 = vld [vmem:[%s4289_s5 + $0x20] sm:$0xff]  }
 0x148   : > { %1684 = vmatpush1.bf16.msra.mxu0 %v3265_v25  ;;  %v3346_v25 = vld [vmem:[%s4289_s5 + $0x60] sm:$0xff]  }
 0x149   : > { %1300 = vmatmul.mubr.bf16.vlgmr.msra.gmra.mxu1 %v1185_v30  ;;  %1685 = vmatprep.subr.bf16.mxu0 %v3273_v28  ;;  %v3348_v27 = vld [vmem:[%s4289_s5 + $0xe0] sm:$0xff]   ;;  %v3351_v30 = vld [vmem:[%s4289_s5 + $0x18] sm:$0xff]  }
 0x14a   : > { %1534 = vmatpush1.bf16.msra.mxu1 %v3268_v29  ;;  %1565 = vmatprep.mubr.bf16.mxu1 %v3450_v2  ;;  %v3349_v28 = vld [vmem:[%s4289_s5 + $0xa0] sm:$0xff]   ;;  %v3350_v29 = vld [vmem:[%s4289_s5 + $0x58] sm:$0xff]  }
 0x14b   : > { %1535 = vmatprep.subr.bf16.mxu1 %v3276_v31  ;;  %v3352_v31 = vld [vmem:[%s4289_s5 + $0xd8] sm:$0xff]  }
 0x14c   : > { %1686 = vmatpush1.bf16.msra.mxu0 %v3271_v32  ;;  %v3353_v32 = vld [vmem:[%s4289_s5 + $0x98] sm:$0xff]  }
 0x14d   : > { %1687 = vmatprep.subr.bf16.mxu0 %v3279_v33  ;;  %v3354_v33 = vld [vmem:[%s4289_s5 + $0x50] sm:$0xff]  }
 0x14e   : > { %1536 = vmatpush1.bf16.msra.mxu1 %v3274_v34  ;;  %v3355_v34 = vld [vmem:[%s4289_s5 + $0x10] sm:$0xff]  }
 0x14f   : > { %1537 = vmatprep.subr.bf16.mxu1 %v3282_v35  ;;  %v3356_v35 = vld [vmem:[%s4289_s5 + $0xd0] sm:$0xff]  }
 0x150   : > { %1688 = vmatpush1.bf16.msra.mxu0 %v3277_v36  ;;  %v3357_v36 = vld [vmem:[%s4289_s5 + $0x90] sm:$0xff]  }
 0x151   : > { %1689 = vmatprep.subr.bf16.mxu0 %v3285_v37  ;;  %v3358_v37 = vld [vmem:[%s4289_s5 + $0x48] sm:$0xff]  }
 0x152   : > { %1538 = vmatpush1.bf16.msra.mxu1 %v3280_v38  ;;  %v3360_v38 = vld [vmem:[%s4289_s5 + $0xc8] sm:$0xff]  }
 0x153   : > { %1539 = vmatprep.subr.bf16.mxu1 %v3288_v39  ;;  %v3359_v39 = vld [vmem:[%s4289_s5 + $0x8] sm:$0xff]  }
 0x154   : > { %1690 = vmatpush1.bf16.msra.mxu0 %v3283_v40  ;;  %v3361_v40 = vld [vmem:[%s4289_s5 + $0x88] sm:$0xff]  }
 0x155   : > { %1691 = vmatprep.subr.bf16.mxu0 %v3291_v41  ;;  %v3362_v41 = vld [vmem:[%s4289_s5 + $0x40] sm:$0xff]  }
 0x156   : > { %1540 = vmatpush1.bf16.msra.mxu1 %v3286_v42  ;;  %v3364_v42 = vld [vmem:[%s4289_s5 + $0xc0] sm:$0xff]  }
 0x157   : > { %1541 = vmatprep.subr.bf16.mxu1 %v3294_v43  ;;  %v3363_v43 = vld [vmem:[%s4289_s5] sm:$0xff]  }
 0x158   : > { %1692 = vmatpush1.bf16.msra.mxu0 %v3289_v44  ;;  %v3365_v44 = vld [vmem:[%s4289_s5 + $0x80] sm:$0xff]  }
 0x159   : > { %1693 = vmatprep.subr.bf16.mxu0 %v3297_v45  ;;  %v3451_v45 = vmov 0.0  }
 0x15a   : > { %1542 = vmatpush1.bf16.msra.mxu1 %v3292_v46 }
 0x15b   : > { %1543 = vmatprep.subr.bf16.mxu1 %v3300_v47 }
 0x15c   : > { %1694 = vmatpush1.bf16.msra.mxu0 %v3295_v48 }
 0x15d   : > { %1695 = vmatprep.subr.bf16.mxu0 %v3303_v49 }
 0x15e   : > { %1544 = vmatpush1.bf16.msra.mxu1 %v3298_v50 }
 0x15f   : > { %1545 = vmatprep.subr.bf16.mxu1 %v3306_v51 }
 0x160   : > { %1696 = vmatpush1.bf16.msra.mxu0 %v3301_v52 }
 0x161   : > { %2955 = vmatprep.subr.bf16.mxu0 %v3334_v13 }
 0x162   : > { %1546 = vmatpush1.bf16.msra.mxu1 %v3304_v55 }
 0x163   : > { %1714 = vmatmul.mubr.bf16.vlgmr.msra.gmra.mxu0 %v1599_v57  ;;  %1547 = vmatprep.subr.bf16.mxu1 %v3309_v56 }
 0x164   : > { %2956 = vmatpush3.bf16.msra.mxu0 %v3335_v14 }
 0x165   : > { %2957 = vmatprep.subr.bf16.mxu0 %v3338_v17 }
 0x166   : > { %1548 = vmatpush1.bf16.msra.mxu1 %v3307_v58 }
 0x167   : > { %1827 = vmatprep.subr.bf16.mxu1 %v3312_v59 }
 0x168   : > { %2958 = vmatpush3.bf16.msra.mxu0 %v3339_v18 }
 0x169   : > { %1566 = vmatmul.mubr.bf16.vlgmr.msra.gmra.mxu1 %v1451_v61  ;;  %2959 = vmatprep.subr.bf16.mxu0 %v3342_v21 }
 0x16a   : > { %1828 = vmatpush1.bf16.msra.mxu1 %v3310_v60  ;;  %1859 = vmatprep.mubr.bf16.mxu1 %v3450_v2  ;;  %v3319_v2 = vld [vmem:[%s4287_s3 + $0x240] ss:$8 sps:$4 sm:$0xff]  }
 0x16b   : > { %1829 = vmatprep.subr.bf16.mxu1 %v3315_v62 }
 0x16c   : > { %2960 = vmatpush3.bf16.msra.mxu0 %v3343_v22 }
 0x16d   : > { %2961 = vmatprep.subr.bf16.mxu0 %v3346_v25 }
 0x16e   : > { %1830 = vmatpush1.bf16.msra.mxu1 %v3313_v63 }
 0x16f   : > { %1831 = vmatprep.subr.bf16.mxu1 %v3318_v0 }
 0x170   : > { %2962 = vmatpush3.bf16.msra.mxu0 %v3347_v26 }
 0x171   : > { %2963 = vmatprep.subr.bf16.mxu0 %v3350_v29 }
 0x172   : > { %1832 = vmatpush1.bf16.msra.mxu1 %v3316_v1 }
 0x173   : > { %1833 = vmatprep.subr.bf16.mxu1 %v3321_v3 }
 0x174   : > { %2964 = vmatpush3.bf16.msra.mxu0 %v3351_v30 }
 0x175   : > { %2965 = vmatprep.subr.bf16.mxu0 %v3354_v33 }
 0x176   : > { %1834 = vmatpush1.bf16.msra.mxu1 %v3319_v2 }
 0x177   : > { %1835 = vmatprep.subr.bf16.mxu1 %v3324_v4 }
 0x178   : > { %2966 = vmatpush3.bf16.msra.mxu0 %v3355_v34  ;;  %v3366_v34 = vld [vmem:[%s4289_s5 + $0x138] sm:$0xff]  }
 0x179   : > { %2967 = vmatprep.subr.bf16.mxu0 %v3358_v37  ;;  %v3368_v37 = vld [vmem:[%s4289_s5 + $0x128] sm:$0xff]  }
 0x17a   : > { %1836 = vmatpush1.bf16.msra.mxu1 %v3322_v5 }
 0x17b   : > { %1837 = vmatprep.subr.bf16.mxu1 %v3327_v6 }
 0x17c   : > { %2968 = vmatpush3.bf16.msra.mxu0 %v3359_v39  ;;  %v3370_v39 = vld [vmem:[%s4289_s5 + $0x118] sm:$0xff]  }
 0x17d   : > { %2969 = vmatprep.subr.bf16.mxu0 %v3362_v41  ;;  %v3372_v41 = vld [vmem:[%s4289_s5 + $0x108] sm:$0xff]  }
 0x17e   : > { %1838 = vmatpush1.bf16.msra.mxu1 %v3325_v7 }
 0x17f   : > { %1839 = vmatprep.subr.bf16.mxu1 %v3330_v8 }
 0x180   : > { %2970 = vmatpush3.bf16.msra.mxu0 %v3363_v43 }
 0x181   : > { %3024 = vmatprep.subr.bf16.mxu0 %v3451_v45 }
 0x182   : > { %1840 = vmatpush1.bf16.msra.mxu1 %v3328_v9 }
 0x183   : > { %1841 = vmatprep.subr.bf16.mxu1 %v3333_v10 }
 0x186   : > { %1842 = vmatpush1.bf16.msra.mxu1 %v3331_v11 }
 0x187   : > { %2977 = vmatprep.subr.bf16.mxu1 %v3336_v15 }
 0x189   : > { %1860 = vmatmul.mubr.bf16.vlgmr.msra.gmra.mxu1 %v1745_v12  ;;  %v2894_v12 = vld [vmem:[%s4288_s4] ss:$0 sm:$0xff] }
 0x18a   : > { %2978 = vmatpush3.bf16.msra.mxu1 %v3337_v16 }
 0x18b   : > { %2979 = vmatprep.subr.bf16.mxu1 %v3340_v19 }
 0x18e   : > { %2980 = vmatpush3.bf16.msra.mxu1 %v3341_v20 }
 0x18f   : > { %2981 = vmatprep.subr.bf16.mxu1 %v3344_v23 }
 0x192   : > { %2982 = vmatpush3.bf16.msra.mxu1 %v3345_v24 }
 0x193   : > { %2983 = vmatprep.subr.bf16.mxu1 %v3348_v27 }
 0x196   : > { %2984 = vmatpush3.bf16.msra.mxu1 %v3349_v28 }
 0x197   : > { %2985 = vmatprep.subr.bf16.mxu1 %v3352_v31 }
 0x19a   : > { %2986 = vmatpush3.bf16.msra.mxu1 %v3353_v32 }
 0x19b   : > { %2987 = vmatprep.subr.bf16.mxu1 %v3356_v35 }
 0x19e   : > { %2988 = vmatpush3.bf16.msra.mxu1 %v3357_v36  ;;  %v3367_v36 = vld [vmem:[%s4289_s5 + $0x130] sm:$0xff]  }
 0x19f   : > { %2989 = vmatprep.subr.bf16.mxu1 %v3360_v38  ;;  %v3369_v38 = vld [vmem:[%s4289_s5 + $0x120] sm:$0xff]  }
 0x1a2   : > { %2990 = vmatpush3.bf16.msra.mxu1 %v3361_v40  ;;  %v3371_v40 = vld [vmem:[%s4289_s5 + $0x110] sm:$0xff]  }
 0x1a3   : > { %2991 = vmatprep.subr.bf16.mxu1 %v3364_v42  ;;  %v3373_v42 = vld [vmem:[%s4289_s5 + $0x100] sm:$0xff]  }
 0x1a6   : > { %2992 = vmatpush3.bf16.msra.mxu1 %v3365_v44 }
 0x1a7   : > { %3044 = vmatprep.subr.bf16.mxu1 %v3451_v45 }
 0x203   : > { %v1424_v48 = vpop.f32.mrf.mxu0 }
 0x205   : > { %v1426_v50 = vpop.f32.mrf.mxu0 }
 0x207   : > { %v1428_v52 = vpop.f32.mrf.mxu0 }
 0x209   : > { %v1301_v46 = vpop.f32.mrf.mxu1  ;;  %v1430_v54 = vpop.f32.mrf.mxu0 }
 0x20a   : > { %v1425_v58 = vadd.f32 %v1424_v48, %v1301_v46  ;;  %v3374_v46 = vld [vmem:[%s4291_s7 + $0x38] ss:$0 sps:$4 sm:$0xff]   ;;  %v3375_v48 = vld [vmem:[%s4291_s7 + $0x30] sm:$0xff]  }
 0x20b   : > { %v1303_v47 = vpop.f32.mrf.mxu1 }
 0x20c   : > { %v1427_v59 = vadd.f32 %v1426_v50, %v1303_v47  ;;  %v2417_v47 = vsel %vm2415_vm6, %v3374_v46, 0  ;;  %v3377_v50 = vld [vmem:[%s4291_s7 + $0x20] sm:$0xff]  }
 0x20d   : > { %v1305_v49 = vpop.f32.mrf.mxu1 }
 0x20e   : > { %v1429_v0 = vadd.f32 %v1428_v52, %v1305_v49  ;;  %v3376_v49 = vld [vmem:[%s4291_s7 + $0x28] sm:$0xff]   ;;  %v3379_v52 = vld [vmem:[%s4291_s7 + $0x10] sm:$0xff]  }
 0x20f   : > { %v1307_v51 = vpop.f32.mrf.mxu1 }
 0x210   : > { %v1431_v1 = vadd.f32 %v1430_v54, %v1307_v51  ;;  %v3378_v51 = vld [vmem:[%s4291_s7 + $0x18] sm:$0xff]   ;;  %v3381_v54 = vld [vmem:[%s4291_s7] sm:$0xff]  }
 0x223   : > { %v1715_v56 = vpop.f32.mrf.mxu0 }
 0x225   : > { %v1717_v60 = vpop.f32.mrf.mxu0 }
 0x227   : > { %v1719_v3 = vpop.f32.mrf.mxu0 }
 0x229   : > { %v1567_v53 = vpop.f32.mrf.mxu1  ;;  %v1721_v11 = vpop.f32.mrf.mxu0 }
 0x22a   : > { %v1576_v61 = vadd.f32 %v1567_v53, %v1425_v58  ;;  %v3380_v53 = vld [vmem:[%s4291_s7 + $0x8] sm:$0xff]   ;;  %v3384_v58 = vld [vmem:[%s4293_s9 + $0x18] sm:$0xff]  }
 0x22b   : > { %v1569_v55 = vpop.f32.mrf.mxu1 }
 0x22c   : > { %v1577_v62 = vadd.f32 %v1569_v55, %v1427_v59  ;;  %v1724_v6 = vadd.f32 %v1715_v56, %v1576_v61  ;;  %v3382_v55 = vld [vmem:[%s4293_s9 + $0x28] ss:$0 sps:$4 sm:$0x33]   ;;  %v3385_v59 = vld [vmem:[%s4293_s9 + $0x10] sm:$0xff]  }
 0x22d   : > { %v1571_v57 = vpop.f32.mrf.mxu1  ;;  %v2512_v56 = vsel %vm2510_vm7, %v3382_v55, 0 }
 0x22e   : > { %v1578_v4 = vadd.f32 %v1571_v57, %v1429_v0  ;;  %v1725_v7 = vadd.f32 %v1717_v60, %v1577_v62  ;;  %v3383_v57 = vld [vmem:[%s4293_s9 + $0x20] sm:$0xff]  }
 0x22f   : > { %v1573_v63 = vpop.f32.mrf.mxu1 }
 0x230   : > { %v1579_v5 = vadd.f32 %v1573_v63, %v1431_v1  ;;  %v1726_v15 = vadd.f32 %v1719_v3, %v1578_v4 }
 0x232   : > { %v1727_v16 = vadd.f32 %v1721_v11, %v1579_v5  ;;  %v1987_v5 = vld [vmem:[%s4290_s6] sm:$0x1] }
 0x249   : > { %v1861_v2 = vpop.f32.mrf.mxu1 }
 0x24a   : > { %v1870_v9 = vadd.f32 %v1861_v2, %v1724_v6 }
 0x24b   : > { %v1863_v8 = vpop.f32.mrf.mxu1 }
 0x24c   : > { %v1871_v10 = vadd.f32 %v1863_v8, %v1725_v7 }
 0x24d   : > { %v1865_v13 = vpop.f32.mrf.mxu1 }
 0x24e   : > { %v1874_v14 = vmax.f32 %v1870_v9, %v1871_v10  ;;  %v1872_v19 = vadd.f32 %v1865_v13, %v1726_v15 }
 0x24f   : > { %v1867_v17 = vpop.f32.mrf.mxu1 }
 0x250   : > { %v1883_v18 = vadd.f32 %v2894_v12, %v1874_v14  ;;  %v1873_v20 = vadd.f32 %v1867_v17, %v1727_v16  ;;  %v3386_v16 = vld [vmem:[%s4293_s9 + $0x8] sm:$0xff]   ;;  %v3387_v17 = vld [vmem:[%s4293_s9] sm:$0xff]  }
 0x252   : > { %v1885_v21 = vmax.f32 %v1883_v18, 0.0  ;;  %v1875_v22 = vmax.f32 %v1872_v19, %v1873_v20  ;;  %v2365_v18 = vld [vmem:[%s4292_s8] sm:$0x1] }
 0x254   : > { %1887 = vst [vmem:[#allocation3] sm:$0xff] %v1885_v21  ;;  %v1884_v23 = vadd.f32 %v2894_v12, %v1875_v22 }
 0x256   : > { %v1886_v24 = vmax.f32 %v1884_v23, 0.0 }
 0x258   : > { %1888 = vst [vmem:[#allocation3 + $0x8] sm:$0x3] %v1886_v24 }
 0x25f   : > { %v1889_v25 = vld [vmem:[#allocation3] ss:$2 sm:$0x1f]  ;;  %v1891_v26 = vld [vmem:[#allocation3 + $0x1] ss:$2 sm:$0x1f] }
 0x260   : > { %v1892_v27 = vmax.f32 %v1889_v25, %v1891_v26 }
 0x262   : > { %v1894_v28 = vrot.slane %v1892_v27, 1  ;;  %v1898_v29 = vrot.slane %v1892_v27, 3  ;;  %v1896_v30 = vrot.slane %v1892_v27, 2  ;;  %v1902_v35 = vpack.c.bf16 %v1892_v27, %v1892_v27 }
 0x263   : > { %v1900_v43 = vrot.slane %v1892_v27, 4 }
 0x264   : > { %v1903_v31 = vpack.c.bf16 %v1894_v28, %v1894_v28  ;;  %v1905_v32 = vpack.c.bf16 %v1898_v29, %v1898_v29  ;;  %v1904_v33 = vpack.c.bf16 %v1896_v30, %v1896_v30 }
 0x265   : > { %v1906_v44 = vpack.c.bf16 %v1900_v43, %v1900_v43 }
 0x266   : > { %2260 = vmatprep.mubr.bf16.mxu0 %v1903_v31  ;;  %2300 = vmatprep.mubr.bf16.mxu1 %v1905_v32 }
 0x267   : > { %2261 = vmatmul.mubr.bf16.vlgmr.msra.gmra.mxu0 %v1902_v35  ;;  %2301 = vmatmul.mubr.bf16.vlgmr.msra.gmra.mxu1 %v1904_v33 }
 0x268   : > { %3025 = vmatpush3.bf16.msra.mxu0 %v3366_v34  ;;  %3040 = vmatprep.mubr.msk.bf16.mxu0 %vm3452_vm5, %v3451_v45 }
 0x269   : > { %3026 = vmatprep.subr.bf16.mxu0 %v3451_v45  ;;  %3060 = vmatprep.mubr.msk.bf16.mxu1 %vm3452_vm5, %v3451_v45 }
 0x26a   : > { %3045 = vmatpush3.bf16.msra.mxu1 %v2417_v47 }
 0x26b   : > { %3046 = vmatprep.subr.bf16.mxu1 %v3451_v45 }
 0x26c   : > { %3027 = vmatpush3.bf16.msra.mxu0 %v3367_v36 }
 0x26d   : > { %3028 = vmatprep.subr.bf16.mxu0 %v3451_v45 }
 0x26e   : > { %3047 = vmatpush3.bf16.msra.mxu1 %v3375_v48 }
 0x26f   : > { %3048 = vmatprep.subr.bf16.mxu1 %v3451_v45 }
 0x270   : > { %3029 = vmatpush3.bf16.msra.mxu0 %v3368_v37 }
 0x271   : > { %3030 = vmatprep.subr.bf16.mxu0 %v3451_v45 }
 0x272   : > { %3049 = vmatpush3.bf16.msra.mxu1 %v3376_v49 }
 0x273   : > { %3050 = vmatprep.subr.bf16.mxu1 %v3451_v45 }
 0x274   : > { %3031 = vmatpush3.bf16.msra.mxu0 %v3369_v38 }
 0x275   : > { %3032 = vmatprep.subr.bf16.mxu0 %v3451_v45 }
 0x276   : > { %3051 = vmatpush3.bf16.msra.mxu1 %v3377_v50 }
 0x277   : > { %3052 = vmatprep.subr.bf16.mxu1 %v3451_v45 }
 0x278   : > { %3033 = vmatpush3.bf16.msra.mxu0 %v3370_v39 }
 0x279   : > { %3034 = vmatprep.subr.bf16.mxu0 %v3451_v45 }
 0x27a   : > { %3053 = vmatpush3.bf16.msra.mxu1 %v3378_v51 }
 0x27b   : > { %3054 = vmatprep.subr.bf16.mxu1 %v3451_v45 }
 0x27c   : > { %3035 = vmatpush3.bf16.msra.mxu0 %v3371_v40 }
 0x27d   : > { %3036 = vmatprep.subr.bf16.mxu0 %v3451_v45 }
 0x27e   : > { %3055 = vmatpush3.bf16.msra.mxu1 %v3379_v52 }
 0x27f   : > { %3056 = vmatprep.subr.bf16.mxu1 %v3451_v45 }
 0x280   : > { %3037 = vmatpush3.bf16.msra.mxu0 %v3372_v41 }
 0x281   : > { %3038 = vmatprep.subr.bf16.mxu0 %v3451_v45 }
 0x282   : > { %3057 = vmatpush3.bf16.msra.mxu1 %v3380_v53 }
 0x283   : > { %3058 = vmatprep.subr.bf16.mxu1 %v3451_v45 }
 0x284   : > { %3039 = vmatpush3.bf16.msra.mxu0 %v3373_v42 }
 0x285   : > { %3064 = vmatprep.subr.bf16.mxu0 %v3451_v45 }
 0x286   : > { %3059 = vmatpush3.bf16.msra.mxu1 %v3381_v54 }
 0x287   : > { %3041 = vmatmul.mubr.bf16.vlgmr.msra.gmra.mxu0 %v1906_v44 }
 0x288   : > { %3076 = vmatprep.mubr.msk.bf16.mxu0 %vm3452_vm5, %v3451_v45  ;;  %3065 = vmatpush3.bf16.msra.mxu0 %v2512_v56 }
 0x289   : > { %3066 = vmatprep.subr.bf16.mxu0 %v3451_v45 }
 0x28c   : > { %3067 = vmatpush3.bf16.msra.mxu0 %v3383_v57 }
 0x28d   : > { %3068 = vmatprep.subr.bf16.mxu0 %v3451_v45 }
 0x290   : > { %3069 = vmatpush3.bf16.msra.mxu0 %v3384_v58 }
 0x291   : > { %3070 = vmatprep.subr.bf16.mxu0 %v3451_v45 }
 0x294   : > { %3071 = vmatpush3.bf16.msra.mxu0 %v3385_v59 }
 0x295   : > { %3072 = vmatprep.subr.bf16.mxu0 %v3451_v45 }
 0x298   : > { %3073 = vmatpush3.bf16.msra.mxu0 %v3386_v16 }
 0x299   : > { %3074 = vmatprep.subr.bf16.mxu0 %v3451_v45  ;;  %v2472_v45 = vld [vmem:[%s4294_s10] sm:$0x1] }
 0x29c   : > { %3075 = vmatpush3.bf16.msra.mxu0 %v3387_v17 }
 0x327   : > { %v2971_v60 = vpop.f32.mrf.mxu0  ;;  %v2993_v61 = vpop.f32.mrf.mxu1 }
 0x329   : > { %v2972_v62 = vpop.f32.mrf.mxu0  ;;  %v2994_v63 = vpop.f32.mrf.mxu1 }
 0x32a   : > { %v2973_v4 = vadd.f32 %v2972_v62, %v2971_v60  ;;  %v2995_v7 = vadd.f32 %v2994_v63, %v2993_v61 }
 0x32b   : > { %v2974_v0 = vpop.f32.mrf.mxu0  ;;  %v2996_v1 = vpop.f32.mrf.mxu1 }
 0x32c   : > { %v2263_v6 = vadd.f32 %v2973_v4, %v1987_v5 }
 0x32d   : > { %v2975_v3 = vpop.f32.mrf.mxu0  ;;  %v2997_v2 = vpop.f32.mrf.mxu1 }
 0x32e   : > { %v2303_v8 = vadd.f32 %v2995_v7, %v2263_v6 }
 0x347   : > { %v2342_v9 = vpop.f32.mrf.mxu0 }
 0x348   : > { %v2343_v10 = vadd.f32 %v2342_v9, %v2303_v8 }
 0x349   : > { %v3042_v11 = vpop.f32.mrf.mxu0 }
 0x34a   : > { %v2348_v12 = vmax.f32 %v2343_v10, 0.0 }
 0x34b   : > { %v2345_v13 = vpop.f32.mrf.mxu0 }
 0x34c   : > { %v2349_v14 = vpack.c.bf16 %v2348_v12, %v2348_v12 }
 0x34d   : > { %v3043_v15 = vpop.f32.mrf.mxu0 }
 0x34e   : > { %3061 = vmatmul.mubr.msk.bf16.vlgmr.msra.gmra.mxu1 %vm2411_vm8, %v2349_v14 }
 0x40e   : > { %v2453_v19 = vpop.f32.mrf.mxu1 }
 0x40f   : > { %v2454_v20 = vadd.f32 %v2453_v19, %v2365_v18 }
 0x410   : > { %v3062_v21 = vpop.f32.mrf.mxu1 }
 0x411   : > { %v2459_v22 = vmax.f32 %v2454_v20, 0.0 }
 0x412   : > { %v2456_v23 = vpop.f32.mrf.mxu1 }
 0x413   : > { %v2460_v24 = vpack.c.bf16 %v2459_v22, %v2459_v22 }
 0x414   : > { %v3063_v25 = vpop.f32.mrf.mxu1 }
 0x415   : > { %3077 = vmatmul.mubr.msk.bf16.vlgmr.msra.gmra.mxu0 %vm2506_vm9, %v2460_v24 }
 0x4d5   : > { %v2548_v26 = vpop.f32.mrf.mxu0 }
 0x4d6   : > { %v2549_v27 = vadd.f32 %v2548_v26, %v2472_v45 }
 0x4d7   : > { %v3078_v28 = vpop.f32.mrf.mxu0 }
 0x4d8   : > { %2554 = vst [vmem:[%s378_s19] sm:$0x1] %v2549_v27 }
 0x4d9   : > { %v2551_v29 = vpop.f32.mrf.mxu0 }
 0x4da   : > { %3401 = shalt.err (!%p3398_p3)
}
 0x4db   : > { %s3402_s15 = scalar_lea.hbm %s4243_s30, 16  ;;  %s3406_s16 = scalar_lea.hbm %s4295_s11, 32 }
 0x4dc   : > { %p3403_p4 = scmp.ne.s32.totalorder %s4243_s30, %s3402_s15  ;;  %p3407_p9 = scmp.lt.s32.totalorder %s4243_s30, %s4295_s11 }
 0x4dd   : > { %p3408_p10 = scmp.lt.s32.totalorder %s3406_s16, %s3402_s15 }
 0x4de   : > { %p3404_p7 = pnand %p3403_p4, %p3552_p5 }
 0x4df   : > { %p3409_p11 = por %p3408_p10, %p3407_p9 }
 0x4e0   : > { %p3405_p8 = pneg %p3404_p7 }
 0x4e2   : > { %p3410_p12 = pnand %p3409_p11, %p3405_p8 }
 0x4e4   : > { %3413 = shalt.err (!%p3410_p12)
}
 0x4e5   : > { %3080 = dma.vmem_to_hbm [thread:$0]  (%p3552_p5), %s4245_s26, 16, %s4243_s30, %s2556_s12   ;;  %v3079_v30 = vpop.f32.mrf.mxu0 }
 0x4e6 PF: > { %p3086_p13 = scmp.ge.s32.totalorder %s3448_s20, 2  ;;  %s2580_s25 = sand.u32 1, %s3436_s17  }
 0x4e7   : > { %s2581_s13 = scalar_lea.sflag [#allocation5], %s2580_s25 }
 0x4e8   : > { %p3083_p0 = pnand %p3086_p13, %p3556_p6 }
 0x4ea   : > { %p3084_p1 = pneg %p3083_p0 }
 0x4ec   : > { %3431 = dma.done.wait (%p3084_p1), %s2581_s13, 16  }
 0x4ed   : > { %3433 = vsyncadd (%p3084_p1), %s2581_s13, 4294967280  ;;  %s4307_s20 = sld [smem:[#allocation8_spill]]  ;;  %s4310_s17 = smov %s3440_s18 }
 0x4ee   : > { %s4308_s21 = sld [smem:[#allocation7_spill]] }
 0x4ef   : > { %s4309_s19 = sld [smem:[#allocation9_spill]] }
 0x4f3   : > { %p21_p2 = scmp.ge.s32.totalorder %s4307_s20, 4  }
 0x4f4   : > { %s4311_s18 = smov %s4308_s21 }
 0x4f5   :  { %23 = sbr.rel (!%p21_p2) target bundleno = 3 (0x3), region = 111 }
 0x4fa   :  { %2585 = vsyncpa [#allocation5], 1 }
 0x4fb   :  { %2587 = vsyncpa [#allocation5 + $0x1], 1 }

</bundles_post_ra>
